<compile_context>
chip_gen: v7x
topology: tpu7x:2x2x1
jax: 0.10.0
libtpu: 0.0.40
codegen_flags: <defaults>
</compile_context>

<pallas_src>
import functools

import jax
import jax.numpy as jnp
from jax.experimental import pallas as pl
from jax.experimental.pallas import tpu as pltpu


# ----------------------------------------------------------------------------
# helpers
# ----------------------------------------------------------------------------
def _round_up(x, m):
    return (x + m - 1) // m * m


def _pick_tile(dim, max_tile, align):
    """Return (padded_dim, tile). tile == padded_dim when dim fits one tile."""
    if dim <= max_tile:
        p = _round_up(dim, align)
        return p, p
    return _round_up(dim, max_tile), max_tile


# ----------------------------------------------------------------------------
# Pallas kernels
# ----------------------------------------------------------------------------
def _linear_kernel(x_ref, w_ref, b_ref, o_ref, acc_ref, *, activation):
    @pl.when(pl.program_id(2) == 0)
    def _():
        acc_ref[...] = jnp.zeros_like(acc_ref)

    acc_ref[...] += jnp.dot(x_ref[...], w_ref[...],
                            preferred_element_type=jnp.float32)

    @pl.when(pl.program_id(2) == pl.num_programs(2) - 1)
    def _():
        y = acc_ref[...] + b_ref[...]          # bias fused
        if activation == "relu":
            y = jnp.maximum(y, 0.0)            # ReLU fused
        o_ref[...] = y


def pallas_linear(x2d, w, b, activation=None):
    """x2d: (M,K) f32, w: (K,N) f32, b: (N,) f32 -> (M,N) f32.

    Tiled matmul with f32 VMEM accumulator; operands cast to bf16 (MXU-native
    on v6e/v7x), dims padded so output stores are lane-dense (N -> mult of 128).
    """
    M, K = x2d.shape
    N = w.shape[1]
    Mp, tm = _pick_tile(M, 256, 8)
    Kp, tk = _pick_tile(K, 512, 128)
    Np, tn = _pick_tile(N, 256, 128)

    xb = x2d.astype(jnp.bfloat16)
    wb = w.astype(jnp.bfloat16)
    if (Mp, Kp) != (M, K):
        xb = jnp.pad(xb, ((0, Mp - M), (0, Kp - K)))
    if (Kp, Np) != (K, N):
        wb = jnp.pad(wb, ((0, Kp - K), (0, Np - N)))
    bp = b if Np == N else jnp.pad(b, (0, Np - N))
    bp = bp.reshape(1, Np).astype(jnp.float32)

    grid = (Mp // tm, Np // tn, Kp // tk)
    out = pl.pallas_call(
        functools.partial(_linear_kernel, activation=activation),
        out_shape=jax.ShapeDtypeStruct((Mp, Np), jnp.float32),
        grid=grid,
        in_specs=[
            pl.BlockSpec((tm, tk), lambda i, j, k: (i, k)),
            pl.BlockSpec((tk, tn), lambda i, j, k: (k, j)),
            pl.BlockSpec((1, tn), lambda i, j, k: (0, j)),
        ],
        out_specs=pl.BlockSpec((tm, tn), lambda i, j, k: (i, j)),
        scratch_shapes=[pltpu.VMEM((tm, tn), jnp.float32)],
        compiler_params=pltpu.CompilerParams(
            dimension_semantics=("parallel", "parallel", "arbitrary")),
    )(xb, wb, bp)
    if (Mp, Np) != (M, N):
        out = out[:M, :N]
    return out


def _add_layernorm_kernel(x_ref, r_ref, g_ref, b_ref, o_ref, *, eps):
    h = x_ref[...] + r_ref[...]                      # fused residual add (f32)
    mean = jnp.mean(h, axis=-1, keepdims=True)
    # one-pass biased variance: E[x^2] - mean^2 (clamped for safety)
    var = jnp.maximum(jnp.mean(h * h, axis=-1, keepdims=True) - mean * mean, 0.0)
    inv = jax.lax.rsqrt(var + eps)                   # EUP rsqrt, not VALU divide
    o_ref[...] = (h - mean) * inv * g_ref[...] + b_ref[...]


def pallas_add_layernorm(x2d, res2d, gamma, beta, eps=1e-12):
    """LayerNorm(x + residual); x2d/res2d: (M, D), gamma/beta: (D,)."""
    M, D = x2d.shape
    Mp, tm = _pick_tile(M, 512, 8)
    if Mp != M:
        x2d = jnp.pad(x2d, ((0, Mp - M), (0, 0)))
        res2d = jnp.pad(res2d, ((0, Mp - M), (0, 0)))
    out = pl.pallas_call(
        functools.partial(_add_layernorm_kernel, eps=eps),
        out_shape=jax.ShapeDtypeStruct((Mp, D), jnp.float32),
        grid=(Mp // tm,),
        in_specs=[
            pl.BlockSpec((tm, D), lambda i: (i, 0)),
            pl.BlockSpec((tm, D), lambda i: (i, 0)),
            pl.BlockSpec((1, D), lambda i: (0, 0)),
            pl.BlockSpec((1, D), lambda i: (0, 0)),
        ],
        out_specs=pl.BlockSpec((tm, D), lambda i: (i, 0)),
        compiler_params=pltpu.CompilerParams(dimension_semantics=("parallel",)),
    )(x2d, res2d, gamma.reshape(1, D), beta.reshape(1, D))
    return out[:M] if Mp != M else out


def _attention_kernel(q_ref, k_ref, v_ref, m_ref, o_ref, *, scale, n_heads):
    mask = m_ref[0, 0]                          # (Tq, Tk) f32, shared by all heads
    q_all = q_ref[0].astype(jnp.bfloat16)       # (Tq, H, d)
    k_all = k_ref[0].astype(jnp.bfloat16)       # (Tk, H, d)
    v_all = v_ref[0].astype(jnp.bfloat16)       # (Tk, H, d)
    for h in range(n_heads):                    # static unroll over heads
        q = q_all[:, h, :]                      # (Tq, d)
        k = k_all[:, h, :]                      # (Tk, d)
        v = v_all[:, h, :]                      # (Tk, d)
        # contract last dims directly -> no explicit k.T transpose
        s = jax.lax.dot_general(q, k, (((1,), (1,)), ((), ())),
                                preferred_element_type=jnp.float32) * scale
        s = jnp.where(mask > 0.0, s, -10000.0)  # masked_fill(mask == 0, -10000)
        s = s - jnp.max(s, axis=-1, keepdims=True)
        p = jnp.exp(s)
        p = p * pl.reciprocal(jnp.sum(p, axis=-1, keepdims=True), approx=True)
        o = jax.lax.dot_general(p.astype(jnp.bfloat16), v,
                                (((1,), (0,)), ((), ())),
                                preferred_element_type=jnp.float32)
        o_ref[0, :, h, :] = o


def pallas_attention(q, k, v, mask_f):
    """q/k/v: (B, T, H, d) f32, mask_f: (B, 1, Tq, Tk) f32 -> (B, Tq, H, d)."""
    B, Tq, H, d = q.shape
    Tk = k.shape[1]
    scale = 1.0 / (float(d) ** 0.5)
    kernel = functools.partial(_attention_kernel, scale=scale, n_heads=H)
    return pl.pallas_call(
        kernel,
        out_shape=jax.ShapeDtypeStruct((B, Tq, H, d), jnp.float32),
        grid=(B,),
        in_specs=[
            pl.BlockSpec((1, Tq, H, d), lambda b: (b, 0, 0, 0)),
            pl.BlockSpec((1, Tk, H, d), lambda b: (b, 0, 0, 0)),
            pl.BlockSpec((1, Tk, H, d), lambda b: (b, 0, 0, 0)),
            pl.BlockSpec((1, 1, Tq, Tk), lambda b: (b, 0, 0, 0)),
        ],
        out_specs=pl.BlockSpec((1, Tq, H, d), lambda b: (b, 0, 0, 0)),
        compiler_params=pltpu.CompilerParams(dimension_semantics=("parallel",)),
    )(q, k, v, mask_f)


# ----------------------------------------------------------------------------
# Parameter construction (deterministic, synthetic)
# ----------------------------------------------------------------------------
def _init_linear(key, d_in, d_out):
    k1, k2 = jax.random.split(key)
    return {
        "w": jax.random.normal(k1, (d_in, d_out), jnp.float32) * 0.02,
        "b": jax.random.normal(k2, (d_out,), jnp.float32) * 0.02,
    }


def _init_norm(d):
    return {"gamma": jnp.ones((d,), jnp.float32), "beta": jnp.zeros((d,), jnp.float32)}


def _init_mha(key, d_model, fused_qkv):
    ks = jax.random.split(key, 4)
    wq = _init_linear(ks[0], d_model, d_model)
    wk = _init_linear(ks[1], d_model, d_model)
    wv = _init_linear(ks[2], d_model, d_model)
    p = {"wc": _init_linear(ks[3], d_model, d_model)}
    if fused_qkv:
        # Q|K|V folded into one (D, 3D) projection -> single pallas_linear call
        p["wqkv"] = {"w": jnp.concatenate([wq["w"], wk["w"], wv["w"]], axis=1),
                     "b": jnp.concatenate([wq["b"], wk["b"], wv["b"]], axis=0)}
    else:
        # cross-attention: Q from decoder stream; K|V share enc_src -> fuse K|V
        p["wq"] = wq
        p["wkv"] = {"w": jnp.concatenate([wk["w"], wv["w"]], axis=1),
                    "b": jnp.concatenate([wk["b"], wv["b"]], axis=0)}
    return p


def _init_ffn(key, d_model, ffn_hidden):
    k1, k2 = jax.random.split(key)
    return {
        "lin1": _init_linear(k1, d_model, ffn_hidden),
        "lin2": _init_linear(k2, ffn_hidden, d_model),
    }


def init_transformer_params(key, src_vocab, trg_vocab, d_model, ffn_hidden,
                            n_layers):
    keys = jax.random.split(key, 4 + 2 * n_layers)
    enc_layers, dec_layers = [], []
    for i in range(n_layers):
        ek = jax.random.split(keys[4 + i], 2)
        enc_layers.append({
            "attn": _init_mha(ek[0], d_model, fused_qkv=True),
            "norm1": _init_norm(d_model),
            "ffn": _init_ffn(ek[1], d_model, ffn_hidden),
            "norm2": _init_norm(d_model),
        })
        dk = jax.random.split(keys[4 + n_layers + i], 3)
        dec_layers.append({
            "self_attn": _init_mha(dk[0], d_model, fused_qkv=True),
            "norm1": _init_norm(d_model),
            "cross_attn": _init_mha(dk[1], d_model, fused_qkv=False),
            "norm2": _init_norm(d_model),
            "ffn": _init_ffn(dk[2], d_model, ffn_hidden),
            "norm3": _init_norm(d_model),
        })
    return {
        "enc_tok_emb": jax.random.normal(keys[0], (src_vocab, d_model), jnp.float32),
        "dec_tok_emb": jax.random.normal(keys[1], (trg_vocab, d_model), jnp.float32),
        "enc_layers": enc_layers,
        "dec_layers": dec_layers,
        "out_linear": _init_linear(keys[2], d_model, trg_vocab),
    }


def sinusoidal_positional_encoding(max_len, d_model):
    pos = jnp.arange(max_len, dtype=jnp.float32)[:, None]
    two_i = jnp.arange(0, d_model, 2, dtype=jnp.float32)[None, :]
    angle = pos / jnp.power(10000.0, two_i / d_model)
    pe = jnp.zeros((max_len, d_model), jnp.float32)
    pe = pe.at[:, 0::2].set(jnp.sin(angle))
    pe = pe.at[:, 1::2].set(jnp.cos(angle))
    return pe


# ----------------------------------------------------------------------------
# Model forward (Pallas kernels for all hot compute)
# ----------------------------------------------------------------------------
def _mha_forward(params, q_in, k_in, v_in, mask, n_heads):
    B, Tq, D = q_in.shape
    Tk = k_in.shape[1]
    d_head = D // n_heads

    if "wqkv" in params:  # self-attention: one fused QKV projection
        qkv = pallas_linear(q_in.reshape(B * Tq, D),
                            params["wqkv"]["w"], params["wqkv"]["b"])
        qkv = qkv.reshape(B, Tq, 3, n_heads, d_head)
        q, k, v = qkv[:, :, 0], qkv[:, :, 1], qkv[:, :, 2]
    else:                 # cross-attention: Q on q_in, fused K|V on k_in
        q = pallas_linear(q_in.reshape(B * Tq, D),
                          params["wq"]["w"], params["wq"]["b"]
                          ).reshape(B, Tq, n_heads, d_head)
        kv = pallas_linear(k_in.reshape(B * Tk, D),
                           params["wkv"]["w"], params["wkv"]["b"]
                           ).reshape(B, Tk, 2, n_heads, d_head)
        k, v = kv[:, :, 0], kv[:, :, 1]

    # H-independent mask: (B, 1, Tq, Tk) only
    mask_f = jnp.broadcast_to(mask, (B, 1, Tq, Tk)).astype(jnp.float32)
    ctx = pallas_attention(q, k, v, mask_f)          # (B, Tq, H, d) -- no transposes
    out = pallas_linear(ctx.reshape(B * Tq, D),
                        params["wc"]["w"], params["wc"]["b"])
    return out.reshape(B, Tq, D)


def _ffn_forward(params, x):
    B, T, D = x.shape
    h = pallas_linear(x.reshape(B * T, D), params["lin1"]["w"], params["lin1"]["b"],
                      activation="relu")
    y = pallas_linear(h, params["lin2"]["w"], params["lin2"]["b"])
    return y.reshape(B, T, D)


def _add_norm(norm_params, x, residual):
    B, T, D = x.shape
    return pallas_add_layernorm(x.reshape(B * T, D), residual.reshape(B * T, D),
                                norm_params["gamma"], norm_params["beta"]
                                ).reshape(B, T, D)


def encoder_forward(params, pe, src, src_mask, n_heads):
    # TODO(synk): embedding gather (jnp.take) left to XLA; a Pallas DMA-gather adds no value at these sizes.
    x = jnp.take(params["enc_tok_emb"], src, axis=0) + pe[None, : src.shape[1], :]
    for layer in params["enc_layers"]:
        _x = x
        x = _mha_forward(layer["attn"], x, x, x, src_mask, n_heads)
        x = _add_norm(layer["norm1"], x, _x)
        _x = x
        x = _ffn_forward(layer["ffn"], x)
        x = _add_norm(layer["norm2"], x, _x)
    return x


def decoder_forward(params, pe, trg, enc_src, trg_mask, src_mask, n_heads):
    x = jnp.take(params["dec_tok_emb"], trg, axis=0) + pe[None, : trg.shape[1], :]
    for layer in params["dec_layers"]:
        _x = x
        x = _mha_forward(layer["self_attn"], x, x, x, trg_mask, n_heads)
        x = _add_norm(layer["norm1"], x, _x)
        _x = x
        x = _mha_forward(layer["cross_attn"], x, enc_src, enc_src, src_mask, n_heads)
        x = _add_norm(layer["norm2"], x, _x)
        _x = x
        x = _ffn_forward(layer["ffn"], x)
        x = _add_norm(layer["norm3"], x, _x)
    B, T, D = x.shape
    logits = pallas_linear(x.reshape(B * T, D),
                           params["out_linear"]["w"], params["out_linear"]["b"])
    return logits.reshape(B, T, -1)


def transformer_forward(params, pe, src, trg, src_pad_idx, trg_pad_idx, n_heads):
    # make_src_mask: (B, 1, 1, S_src)
    src_mask = (src != src_pad_idx)[:, None, None, :]
    # make_trg_mask: pad mask (B,1,1,T) & causal tril (T,T) -> (B,1,T,T)
    T = trg.shape[1]
    trg_pad_mask = (trg != trg_pad_idx)[:, None, None, :]
    trg_sub_mask = jnp.tril(jnp.ones((T, T), jnp.bool_))
    trg_mask = jnp.logical_and(trg_pad_mask, trg_sub_mask[None, None, :, :])

    enc_src = encoder_forward(params, pe, src, src_mask, n_heads)
    out = decoder_forward(params, pe, trg, enc_src, trg_mask, src_mask, n_heads)
    return out


# ----------------------------------------------------------------------------
# Main
# ----------------------------------------------------------------------------
if __name__ == "__main__":
    src_pad_idx = 0
    trg_pad_idx = 0
    src_vocab_size = 53
    trg_vocab_size = 61
    max_seq_len = 16
    d_model = 32
    ffn_hidden = 64
    n_heads = 4
    n_layers = 2
    # dropout = 0.1 in training; inference-mode forward -> dropout is identity.

    batch = 2
    src_len = 8
    trg_len = 8

    key = jax.random.PRNGKey(0)
    k_params, k_src, k_trg = jax.random.split(key, 3)

    params = init_transformer_params(k_params, src_vocab_size, trg_vocab_size,
                                     d_model, ffn_hidden, n_layers)
    pe = sinusoidal_positional_encoding(max_seq_len, d_model)

    src = jax.random.randint(k_src, (batch, src_len), 1, src_vocab_size, jnp.int32)
    trg = jax.random.randint(k_trg, (batch, trg_len), 1, trg_vocab_size, jnp.int32)
    # inject a couple of pad tokens so the masks are exercised
    src = src.at[0, -2:].set(src_pad_idx)
    trg = trg.at[1, -1:].set(trg_pad_idx)

    fwd = jax.jit(functools.partial(transformer_forward,
                                    src_pad_idx=src_pad_idx,
                                    trg_pad_idx=trg_pad_idx,
                                    n_heads=n_heads))
    out = fwd(params, pe, src, trg)
    out = jax.block_until_ready(out)

    assert out.shape == (batch, trg_len, trg_vocab_size), out.shape
    assert bool(jnp.all(jnp.isfinite(out)))
    print("KERNEL_OK")
</pallas_src>

<mosaic_0001>
module attributes {stable_mosaic.version = 11 : i64} {
  func.func @_linear_kernel(%arg0: i32, %arg1: i32, %arg2: i32, %arg3: memref<16x128xbf16, #tpu.memory_space<vmem>>, %arg4: memref<128x128xbf16, #tpu.memory_space<vmem>>, %arg5: memref<1x128xf32, #tpu.memory_space<vmem>>, %arg6: memref<16x128xf32, #tpu.memory_space<vmem>>, %arg7: memref<16x128xf32, #tpu.memory_space<vmem>>) attributes {dimension_semantics = [#tpu.dimension_semantics<parallel>, #tpu.dimension_semantics<parallel>, #tpu.dimension_semantics<arbitrary>], iteration_bounds = array<i64: 1, 1, 1>, scalar_prefetch = 0 : i64, scratch_operands = 1 : i64, tpu.core_type = #tpu.core_type<tc>, window_params = [{transform_indices = @transform_0, window_bounds = array<i64: 16, 128>}, {transform_indices = @transform_1, window_bounds = array<i64: 128, 128>}, {transform_indices = @transform_2, window_bounds = array<i64: 1, 128>}, {transform_indices = @transform_3, window_bounds = array<i64: 16, 128>}]} {
    %c0_i32 = arith.constant 0 : i32
    %0 = arith.cmpi eq, %arg2, %c0_i32 : i32
    %1 = arith.extui %0 : i1 to i32
    %c0_i32_0 = arith.constant 0 : i32
    %2 = arith.cmpi ne, %1, %c0_i32_0 : i32
    scf.if %2 {
      %cst_10 = arith.constant 0.000000e+00 : f32
      %12 = vector.broadcast %cst_10 : f32 to vector<16x128xf32>
      %c0_11 = arith.constant 0 : index
      %c0_12 = arith.constant 0 : index
      %13 = vector.load %arg7[%c0_11, %c0_12] : memref<16x128xf32, #tpu.memory_space<vmem>>, vector<16x128xf32>
      tpu.vector_store %arg7[%c0_11, %c0_12], %12 {strides = array<i32>} : memref<16x128xf32, #tpu.memory_space<vmem>>, vector<16x128xf32>,
    } else {
    }
    %c0 = arith.constant 0 : index
    %c0_1 = arith.constant 0 : index
    %3 = vector.load %arg7[%c0, %c0_1] : memref<16x128xf32, #tpu.memory_space<vmem>>, vector<16x128xf32>
    %c0_2 = arith.constant 0 : index
    %c0_3 = arith.constant 0 : index
    %4 = vector.load %arg3[%c0_2, %c0_3] : memref<16x128xbf16, #tpu.memory_space<vmem>>, vector<16x128xbf16>
    %c0_4 = arith.constant 0 : index
    %c0_5 = arith.constant 0 : index
    %5 = vector.load %arg4[%c0_4, %c0_5] : memref<128x128xbf16, #tpu.memory_space<vmem>>, vector<128x128xbf16>
    %cst = arith.constant dense<0.000000e+00> : vector<16x128xf32>
    %6 = tpu.matmul %4, %5, %cst {dimension_numbers = #tpu.dot_dimension_numbers<[1], [0], [0], [1], [0, 0, 1, 1], [], []>} : vector<16x128xbf16>, vector<128x128xbf16>, vector<16x128xf32> -> vector<16x128xf32>
    %7 = arith.addf %3, %6 : vector<16x128xf32>
    %c0_6 = arith.constant 0 : index
    %c0_7 = arith.constant 0 : index
    %8 = vector.load %arg7[%c0_6, %c0_7] : memref<16x128xf32, #tpu.memory_space<vmem>>, vector<16x128xf32>
    tpu.vector_store %arg7[%c0_6, %c0_7], %7 {strides = array<i32>} : memref<16x128xf32, #tpu.memory_space<vmem>>, vector<16x128xf32>,
    %c0_i32_8 = arith.constant 0 : i32
    %9 = arith.cmpi eq, %arg2, %c0_i32_8 : i32
    %10 = arith.extui %9 : i1 to i32
    %c0_i32_9 = arith.constant 0 : i32
    %11 = arith.cmpi ne, %10, %c0_i32_9 : i32
    scf.if %11 {
      %c0_10 = arith.constant 0 : index
      %c0_11 = arith.constant 0 : index
      %12 = vector.load %arg7[%c0_10, %c0_11] : memref<16x128xf32, #tpu.memory_space<vmem>>, vector<16x128xf32>
      %c0_12 = arith.constant 0 : index
      %c0_13 = arith.constant 0 : index
      %13 = vector.load %arg5[%c0_12, %c0_13] : memref<1x128xf32, #tpu.memory_space<vmem>>, vector<1x128xf32>
      %14 = vector.broadcast %13 : vector<1x128xf32> to vector<16x128xf32>
      %15 = arith.addf %12, %14 : vector<16x128xf32>
      %c0_14 = arith.constant 0 : index
      %c0_15 = arith.constant 0 : index
      %16 = vector.load %arg6[%c0_14, %c0_15] : memref<16x128xf32, #tpu.memory_space<vmem>>, vector<16x128xf32>
      tpu.vector_store %arg6[%c0_14, %c0_15], %15 {strides = array<i32>} : memref<16x128xf32, #tpu.memory_space<vmem>>, vector<16x128xf32>,
    } else {
    }
    return
  }
  func.func @transform_0(%arg0: i32, %arg1: i32, %arg2: i32) -> (i32, i32) {
    %c0_i32 = arith.constant 0 : i32
    return %arg0, %arg2 : i32, i32
  }
  func.func @transform_1(%arg0: i32, %arg1: i32, %arg2: i32) -> (i32, i32) {
    %c0_i32 = arith.constant 0 : i32
    return %arg2, %arg1 : i32, i32
  }
  func.func @transform_2(%arg0: i32, %arg1: i32, %arg2: i32) -> (i32, i32) {
    %c0_i32 = arith.constant 0 : i32
    %c0_i32_0 = arith.constant 0 : i32
    return %c0_i32, %arg1 : i32, i32
  }
  func.func @transform_3(%arg0: i32, %arg1: i32, %arg2: i32) -> (i32, i32) {
    %c0_i32 = arith.constant 0 : i32
    return %arg0, %arg1 : i32, i32
  }
}

module attributes {stable_mosaic.version = 11 : i64} {
  func.func @_attention_kernel(%arg0: i32, %arg1: memref<1x8x4x8xf32, #tpu.memory_space<vmem>>, %arg2: memref<1x8x4x8xf32, #tpu.memory_space<vmem>>, %arg3: memref<1x8x4x8xf32, #tpu.memory_space<vmem>>, %arg4: memref<1x1x8x8xf32, #tpu.memory_space<vmem>>, %arg5: memref<1x8x4x8xf32, #tpu.memory_space<vmem>>) attributes {dimension_semantics = [#tpu.dimension_semantics<parallel>], iteration_bounds = array<i64: 2>, scalar_prefetch = 0 : i64, scratch_operands = 0 : i64, tpu.core_type = #tpu.core_type<tc>, window_params = [{transform_indices = @transform_0, window_bounds = array<i64: 1, 8, 4, 8>}, {transform_indices = @transform_1, window_bounds = array<i64: 1, 8, 4, 8>}, {transform_indices = @transform_2, window_bounds = array<i64: 1, 8, 4, 8>}, {transform_indices = @transform_3, window_bounds = array<i64: 1, 1, 8, 8>}, {transform_indices = @transform_4, window_bounds = array<i64: 1, 8, 4, 8>}]} {
    %c0 = arith.constant 0 : index
    %c0_0 = arith.constant 0 : index
    %c0_1 = arith.constant 0 : index
    %c0_2 = arith.constant 0 : index
    %0 = vector.load %arg4[%c0, %c0_0, %c0_1, %c0_2] : memref<1x1x8x8xf32, #tpu.memory_space<vmem>>, vector<1x1x8x8xf32>
    %1 = vector.shape_cast %0 : vector<1x1x8x8xf32> to vector<8x8xf32>
    %c0_3 = arith.constant 0 : index
    %c0_4 = arith.constant 0 : index
    %c0_5 = arith.constant 0 : index
    %c0_6 = arith.constant 0 : index
    %2 = vector.load %arg1[%c0_3, %c0_4, %c0_5, %c0_6] : memref<1x8x4x8xf32, #tpu.memory_space<vmem>>, vector<1x8x4x8xf32>
    %3 = vector.shape_cast %2 : vector<1x8x4x8xf32> to vector<8x4x8xf32>
    %4 = arith.truncf %3 : vector<8x4x8xf32> to vector<8x4x8xbf16>
    %c0_7 = arith.constant 0 : index
    %c0_8 = arith.constant 0 : index
    %c0_9 = arith.constant 0 : index
    %c0_10 = arith.constant 0 : index
    %5 = vector.load %arg2[%c0_7, %c0_8, %c0_9, %c0_10] : memref<1x8x4x8xf32, #tpu.memory_space<vmem>>, vector<1x8x4x8xf32>
    %6 = vector.shape_cast %5 : vector<1x8x4x8xf32> to vector<8x4x8xf32>
    %7 = arith.truncf %6 : vector<8x4x8xf32> to vector<8x4x8xbf16>
    %c0_11 = arith.constant 0 : index
    %c0_12 = arith.constant 0 : index
    %c0_13 = arith.constant 0 : index
    %c0_14 = arith.constant 0 : index
    %8 = vector.load %arg3[%c0_11, %c0_12, %c0_13, %c0_14] : memref<1x8x4x8xf32, #tpu.memory_space<vmem>>, vector<1x8x4x8xf32>
    %9 = vector.shape_cast %8 : vector<1x8x4x8xf32> to vector<8x4x8xf32>
    %10 = arith.truncf %9 : vector<8x4x8xf32> to vector<8x4x8xbf16>
    %11 = vector.extract_strided_slice %4 {offsets = [0, 0, 0], sizes = [8, 1, 8], strides = [1, 1, 1]} : vector<8x4x8xbf16> to vector<8x1x8xbf16>
    %12 = vector.shape_cast %11 : vector<8x1x8xbf16> to vector<8x8xbf16>
    %13 = vector.extract_strided_slice %7 {offsets = [0, 0, 0], sizes = [8, 1, 8], strides = [1, 1, 1]} : vector<8x4x8xbf16> to vector<8x1x8xbf16>
    %14 = vector.shape_cast %13 : vector<8x1x8xbf16> to vector<8x8xbf16>
    %15 = vector.extract_strided_slice %10 {offsets = [0, 0, 0], sizes = [8, 1, 8], strides = [1, 1, 1]} : vector<8x4x8xbf16> to vector<8x1x8xbf16>
    %16 = vector.shape_cast %15 : vector<8x1x8xbf16> to vector<8x8xbf16>
    %cst = arith.constant dense<0.000000e+00> : vector<8x8xf32>
    %17 = tpu.matmul %12, %14, %cst {dimension_numbers = #tpu.dot_dimension_numbers<[1], [1], [0], [0], [0, 0, 1, 0], [], []>} : vector<8x8xbf16>, vector<8x8xbf16>, vector<8x8xf32> -> vector<8x8xf32>
    %cst_15 = arith.constant 0.353553385 : f32
    %18 = vector.broadcast %cst_15 : f32 to vector<8x8xf32>
    %19 = arith.mulf %17, %18 : vector<8x8xf32>
    %cst_16 = arith.constant 0.000000e+00 : f32
    %20 = vector.broadcast %cst_16 : f32 to vector<8x8xf32>
    %21 = arith.cmpf ogt, %1, %20 : vector<8x8xf32>
    %cst_17 = arith.constant -1.000000e+04 : f32
    %22 = vector.broadcast %cst_17 : f32 to vector<8x8xf32>
    %23 = arith.select %21, %19, %22 : vector<8x8xi1>, vector<8x8xf32>
    %cst_18 = arith.constant dense<0xFF800000> : vector<8xf32>
    %24 = vector.multi_reduction <maximumf>, %23, %cst_18 [1] : vector<8x8xf32> to vector<8xf32>
    %25 = vector.shape_cast %24 : vector<8xf32> to vector<8x1xf32>
    %26 = vector.broadcast %25 : vector<8x1xf32> to vector<8x8xf32>
    %27 = arith.subf %23, %26 : vector<8x8xf32>
    %28 = math.exp %27 : vector<8x8xf32>
    %cst_19 = arith.constant dense<0.000000e+00> : vector<8xf32>
    %29 = vector.multi_reduction <add>, %28, %cst_19 [1] : vector<8x8xf32> to vector<8xf32>
    %30 = vector.shape_cast %29 : vector<8xf32> to vector<8x1xf32>
    %31 = tpu.reciprocal %30 {approx = true} : vector<8x1xf32> -> vector<8x1xf32>
    %32 = vector.broadcast %31 : vector<8x1xf32> to vector<8x8xf32>
    %33 = arith.mulf %28, %32 : vector<8x8xf32>
    %34 = arith.truncf %33 : vector<8x8xf32> to vector<8x8xbf16>
    %cst_20 = arith.constant dense<0.000000e+00> : vector<8x8xf32>
    %35 = tpu.matmul %34, %16, %cst_20 {dimension_numbers = #tpu.dot_dimension_numbers<[1], [0], [0], [1], [0, 0, 1, 1], [], []>} : vector<8x8xbf16>, vector<8x8xbf16>, vector<8x8xf32> -> vector<8x8xf32>
    %c0_21 = arith.constant 0 : index
    %c0_22 = arith.constant 0 : index
    %c0_23 = arith.constant 0 : index
    %c0_24 = arith.constant 0 : index
    %36 = vector.load %arg5[%c0_21, %c0_22, %c0_23, %c0_24] : memref<1x8x4x8xf32, #tpu.memory_space<vmem>>, vector<1x8x1x8xf32>
    %37 = vector.shape_cast %36 : vector<1x8x1x8xf32> to vector<8x8xf32>
    %38 = vector.shape_cast %35 : vector<8x8xf32> to vector<1x8x1x8xf32>
    tpu.vector_store %arg5[%c0_21, %c0_22, %c0_23, %c0_24], %38 {strides = array<i32>} : memref<1x8x4x8xf32, #tpu.memory_space<vmem>>, vector<1x8x1x8xf32>,
    %39 = vector.extract_strided_slice %4 {offsets = [0, 1, 0], sizes = [8, 1, 8], strides = [1, 1, 1]} : vector<8x4x8xbf16> to vector<8x1x8xbf16>
    %40 = vector.shape_cast %39 : vector<8x1x8xbf16> to vector<8x8xbf16>
    %41 = vector.extract_strided_slice %7 {offsets = [0, 1, 0], sizes = [8, 1, 8], strides = [1, 1, 1]} : vector<8x4x8xbf16> to vector<8x1x8xbf16>
    %42 = vector.shape_cast %41 : vector<8x1x8xbf16> to vector<8x8xbf16>
    %43 = vector.extract_strided_slice %10 {offsets = [0, 1, 0], sizes = [8, 1, 8], strides = [1, 1, 1]} : vector<8x4x8xbf16> to vector<8x1x8xbf16>
    %44 = vector.shape_cast %43 : vector<8x1x8xbf16> to vector<8x8xbf16>
    %cst_25 = arith.constant dense<0.000000e+00> : vector<8x8xf32>
    %45 = tpu.matmul %40, %42, %cst_25 {dimension_numbers = #tpu.dot_dimension_numbers<[1], [1], [0], [0], [0, 0, 1, 0], [], []>} : vector<8x8xbf16>, vector<8x8xbf16>, vector<8x8xf32> -> vector<8x8xf32>
    %cst_26 = arith.constant 0.353553385 : f32
    %46 = vector.broadcast %cst_26 : f32 to vector<8x8xf32>
    %47 = arith.mulf %45, %46 : vector<8x8xf32>
    %cst_27 = arith.constant 0.000000e+00 : f32
    %48 = vector.broadcast %cst_27 : f32 to vector<8x8xf32>
    %49 = arith.cmpf ogt, %1, %48 : vector<8x8xf32>
    %cst_28 = arith.constant -1.000000e+04 : f32
    %50 = vector.broadcast %cst_28 : f32 to vector<8x8xf32>
    %51 = arith.select %49, %47, %50 : vector<8x8xi1>, vector<8x8xf32>
    %cst_29 = arith.constant dense<0xFF800000> : vector<8xf32>
    %52 = vector.multi_reduction <maximumf>, %51, %cst_29 [1] : vector<8x8xf32> to vector<8xf32>
    %53 = vector.shape_cast %52 : vector<8xf32> to vector<8x1xf32>
    %54 = vector.broadcast %53 : vector<8x1xf32> to vector<8x8xf32>
    %55 = arith.subf %51, %54 : vector<8x8xf32>
    %56 = math.exp %55 : vector<8x8xf32>
    %cst_30 = arith.constant dense<0.000000e+00> : vector<8xf32>
    %57 = vector.multi_reduction <add>, %56, %cst_30 [1] : vector<8x8xf32> to vector<8xf32>
    %58 = vector.shape_cast %57 : vector<8xf32> to vector<8x1xf32>
    %59 = tpu.reciprocal %58 {approx = true} : vector<8x1xf32> -> vector<8x1xf32>
    %60 = vector.broadcast %59 : vector<8x1xf32> to vector<8x8xf32>
    %61 = arith.mulf %56, %60 : vector<8x8xf32>
    %62 = arith.truncf %61 : vector<8x8xf32> to vector<8x8xbf16>
    %cst_31 = arith.constant dense<0.000000e+00> : vector<8x8xf32>
    %63 = tpu.matmul %62, %44, %cst_31 {dimension_numbers = #tpu.dot_dimension_numbers<[1], [0], [0], [1], [0, 0, 1, 1], [], []>} : vector<8x8xbf16>, vector<8x8xbf16>, vector<8x8xf32> -> vector<8x8xf32>
    %c0_32 = arith.constant 0 : index
    %c0_33 = arith.constant 0 : index
    %c1 = arith.constant 1 : index
    %c0_34 = arith.constant 0 : index
    %64 = vector.load %arg5[%c0_32, %c0_33, %c1, %c0_34] : memref<1x8x4x8xf32, #tpu.memory_space<vmem>>, vector<1x8x1x8xf32>
    %65 = vector.shape_cast %64 : vector<1x8x1x8xf32> to vector<8x8xf32>
    %66 = vector.shape_cast %63 : vector<8x8xf32> to vector<1x8x1x8xf32>
    tpu.vector_store %arg5[%c0_32, %c0_33, %c1, %c0_34], %66 {strides = array<i32>} : memref<1x8x4x8xf32, #tpu.memory_space<vmem>>, vector<1x8x1x8xf32>,
    %67 = vector.extract_strided_slice %4 {offsets = [0, 2, 0], sizes = [8, 1, 8], strides = [1, 1, 1]} : vector<8x4x8xbf16> to vector<8x1x8xbf16>
    %68 = vector.shape_cast %67 : vector<8x1x8xbf16> to vector<8x8xbf16>
    %69 = vector.extract_strided_slice %7 {offsets = [0, 2, 0], sizes = [8, 1, 8], strides = [1, 1, 1]} : vector<8x4x8xbf16> to vector<8x1x8xbf16>
    %70 = vector.shape_cast %69 : vector<8x1x8xbf16> to vector<8x8xbf16>
    %71 = vector.extract_strided_slice %10 {offsets = [0, 2, 0], sizes = [8, 1, 8], strides = [1, 1, 1]} : vector<8x4x8xbf16> to vector<8x1x8xbf16>
    %72 = vector.shape_cast %71 : vector<8x1x8xbf16> to vector<8x8xbf16>
    %cst_35 = arith.constant dense<0.000000e+00> : vector<8x8xf32>
    %73 = tpu.matmul %68, %70, %cst_35 {dimension_numbers = #tpu.dot_dimension_numbers<[1], [1], [0], [0], [0, 0, 1, 0], [], []>} : vector<8x8xbf16>, vector<8x8xbf16>, vector<8x8xf32> -> vector<8x8xf32>
    %cst_36 = arith.constant 0.353553385 : f32
    %74 = vector.broadcast %cst_36 : f32 to vector<8x8xf32>
    %75 = arith.mulf %73, %74 : vector<8x8xf32>
    %cst_37 = arith.constant 0.000000e+00 : f32
    %76 = vector.broadcast %cst_37 : f32 to vector<8x8xf32>
    %77 = arith.cmpf ogt, %1, %76 : vector<8x8xf32>
    %cst_38 = arith.constant -1.000000e+04 : f32
    %78 = vector.broadcast %cst_38 : f32 to vector<8x8xf32>
    %79 = arith.select %77, %75, %78 : vector<8x8xi1>, vector<8x8xf32>
    %cst_39 = arith.constant dense<0xFF800000> : vector<8xf32>
    %80 = vector.multi_reduction <maximumf>, %79, %cst_39 [1] : vector<8x8xf32> to vector<8xf32>
    %81 = vector.shape_cast %80 : vector<8xf32> to vector<8x1xf32>
    %82 = vector.broadcast %81 : vector<8x1xf32> to vector<8x8xf32>
    %83 = arith.subf %79, %82 : vector<8x8xf32>
    %84 = math.exp %83 : vector<8x8xf32>
    %cst_40 = arith.constant dense<0.000000e+00> : vector<8xf32>
    %85 = vector.multi_reduction <add>, %84, %cst_40 [1] : vector<8x8xf32> to vector<8xf32>
    %86 = vector.shape_cast %85 : vector<8xf32> to vector<8x1xf32>
    %87 = tpu.reciprocal %86 {approx = true} : vector<8x1xf32> -> vector<8x1xf32>
    %88 = vector.broadcast %87 : vector<8x1xf32> to vector<8x8xf32>
    %89 = arith.mulf %84, %88 : vector<8x8xf32>
    %90 = arith.truncf %89 : vector<8x8xf32> to vector<8x8xbf16>
    %cst_41 = arith.constant dense<0.000000e+00> : vector<8x8xf32>
    %91 = tpu.matmul %90, %72, %cst_41 {dimension_numbers = #tpu.dot_dimension_numbers<[1], [0], [0], [1], [0, 0, 1, 1], [], []>} : vector<8x8xbf16>, vector<8x8xbf16>, vector<8x8xf32> -> vector<8x8xf32>
    %c0_42 = arith.constant 0 : index
    %c0_43 = arith.constant 0 : index
    %c2 = arith.constant 2 : index
    %c0_44 = arith.constant 0 : index
    %92 = vector.load %arg5[%c0_42, %c0_43, %c2, %c0_44] : memref<1x8x4x8xf32, #tpu.memory_space<vmem>>, vector<1x8x1x8xf32>
    %93 = vector.shape_cast %92 : vector<1x8x1x8xf32> to vector<8x8xf32>
    %94 = vector.shape_cast %91 : vector<8x8xf32> to vector<1x8x1x8xf32>
    tpu.vector_store %arg5[%c0_42, %c0_43, %c2, %c0_44], %94 {strides = array<i32>} : memref<1x8x4x8xf32, #tpu.memory_space<vmem>>, vector<1x8x1x8xf32>,
    %95 = vector.extract_strided_slice %4 {offsets = [0, 3, 0], sizes = [8, 1, 8], strides = [1, 1, 1]} : vector<8x4x8xbf16> to vector<8x1x8xbf16>
    %96 = vector.shape_cast %95 : vector<8x1x8xbf16> to vector<8x8xbf16>
    %97 = vector.extract_strided_slice %7 {offsets = [0, 3, 0], sizes = [8, 1, 8], strides = [1, 1, 1]} : vector<8x4x8xbf16> to vector<8x1x8xbf16>
    %98 = vector.shape_cast %97 : vector<8x1x8xbf16> to vector<8x8xbf16>
    %99 = vector.extract_strided_slice %10 {offsets = [0, 3, 0], sizes = [8, 1, 8], strides = [1, 1, 1]} : vector<8x4x8xbf16> to vector<8x1x8xbf16>
    %100 = vector.shape_cast %99 : vector<8x1x8xbf16> to vector<8x8xbf16>
    %cst_45 = arith.constant dense<0.000000e+00> : vector<8x8xf32>
    %101 = tpu.matmul %96, %98, %cst_45 {dimension_numbers = #tpu.dot_dimension_numbers<[1], [1], [0], [0], [0, 0, 1, 0], [], []>} : vector<8x8xbf16>, vector<8x8xbf16>, vector<8x8xf32> -> vector<8x8xf32>
    %cst_46 = arith.constant 0.353553385 : f32
    %102 = vector.broadcast %cst_46 : f32 to vector<8x8xf32>
    %103 = arith.mulf %101, %102 : vector<8x8xf32>
    %cst_47 = arith.constant 0.000000e+00 : f32
    %104 = vector.broadcast %cst_47 : f32 to vector<8x8xf32>
    %105 = arith.cmpf ogt, %1, %104 : vector<8x8xf32>
    %cst_48 = arith.constant -1.000000e+04 : f32
    %106 = vector.broadcast %cst_48 : f32 to vector<8x8xf32>
    %107 = arith.select %105, %103, %106 : vector<8x8xi1>, vector<8x8xf32>
    %cst_49 = arith.constant dense<0xFF800000> : vector<8xf32>
    %108 = vector.multi_reduction <maximumf>, %107, %cst_49 [1] : vector<8x8xf32> to vector<8xf32>
    %109 = vector.shape_cast %108 : vector<8xf32> to vector<8x1xf32>
    %110 = vector.broadcast %109 : vector<8x1xf32> to vector<8x8xf32>
    %111 = arith.subf %107, %110 : vector<8x8xf32>
    %112 = math.exp %111 : vector<8x8xf32>
    %cst_50 = arith.constant dense<0.000000e+00> : vector<8xf32>
    %113 = vector.multi_reduction <add>, %112, %cst_50 [1] : vector<8x8xf32> to vector<8xf32>
    %114 = vector.shape_cast %113 : vector<8xf32> to vector<8x1xf32>
    %115 = tpu.reciprocal %114 {approx = true} : vector<8x1xf32> -> vector<8x1xf32>
    %116 = vector.broadcast %115 : vector<8x1xf32> to vector<8x8xf32>
    %117 = arith.mulf %112, %116 : vector<8x8xf32>
    %118 = arith.truncf %117 : vector<8x8xf32> to vector<8x8xbf16>
    %cst_51 = arith.constant dense<0.000000e+00> : vector<8x8xf32>
    %119 = tpu.matmul %118, %100, %cst_51 {dimension_numbers = #tpu.dot_dimension_numbers<[1], [0], [0], [1], [0, 0, 1, 1], [], []>} : vector<8x8xbf16>, vector<8x8xbf16>, vector<8x8xf32> -> vector<8x8xf32>
    %c0_52 = arith.constant 0 : index
    %c0_53 = arith.constant 0 : index
    %c3 = arith.constant 3 : index
    %c0_54 = arith.constant 0 : index
    %120 = vector.load %arg5[%c0_52, %c0_53, %c3, %c0_54] : memref<1x8x4x8xf32, #tpu.memory_space<vmem>>, vector<1x8x1x8xf32>
    %121 = vector.shape_cast %120 : vector<1x8x1x8xf32> to vector<8x8xf32>
    %122 = vector.shape_cast %119 : vector<8x8xf32> to vector<1x8x1x8xf32>
    tpu.vector_store %arg5[%c0_52, %c0_53, %c3, %c0_54], %122 {strides = array<i32>} : memref<1x8x4x8xf32, #tpu.memory_space<vmem>>, vector<1x8x1x8xf32>,
    return
  }
  func.func @transform_0(%arg0: i32) -> (i32, i32, i32, i32) {
    %c0_i32 = arith.constant 0 : i32
    %c0_i32_0 = arith.constant 0 : i32
    %c0_i32_1 = arith.constant 0 : i32
    %c0_i32_2 = arith.constant 0 : i32
    return %arg0, %c0_i32, %c0_i32_0, %c0_i32_1 : i32, i32, i32, i32
  }
  func.func @transform_1(%arg0: i32) -> (i32, i32, i32, i32) {
    %c0_i32 = arith.constant 0 : i32
    %c0_i32_0 = arith.constant 0 : i32
    %c0_i32_1 = arith.constant 0 : i32
    %c0_i32_2 = arith.constant 0 : i32
    return %arg0, %c0_i32, %c0_i32_0, %c0_i32_1 : i32, i32, i32, i32
  }
  func.func @transform_2(%arg0: i32) -> (i32, i32, i32, i32) {
    %c0_i32 = arith.constant 0 : i32
    %c0_i32_0 = arith.constant 0 : i32
    %c0_i32_1 = arith.constant 0 : i32
    %c0_i32_2 = arith.constant 0 : i32
    return %arg0, %c0_i32, %c0_i32_0, %c0_i32_1 : i32, i32, i32, i32
  }
  func.func @transform_3(%arg0: i32) -> (i32, i32, i32, i32) {
    %c0_i32 = arith.constant 0 : i32
    %c0_i32_0 = arith.constant 0 : i32
    %c0_i32_1 = arith.constant 0 : i32
    %c0_i32_2 = arith.constant 0 : i32
    return %arg0, %c0_i32, %c0_i32_0, %c0_i32_1 : i32, i32, i32, i32
  }
  func.func @transform_4(%arg0: i32) -> (i32, i32, i32, i32) {
    %c0_i32 = arith.constant 0 : i32
    %c0_i32_0 = arith.constant 0 : i32
    %c0_i32_1 = arith.constant 0 : i32
    %c0_i32_2 = arith.constant 0 : i32
    return %arg0, %c0_i32, %c0_i32_0, %c0_i32_1 : i32, i32, i32, i32
  }
}

module attributes {stable_mosaic.version = 11 : i64} {
  func.func @_add_layernorm_kernel(%arg0: i32, %arg1: memref<16x32xf32, #tpu.memory_space<vmem>>, %arg2: memref<16x32xf32, #tpu.memory_space<vmem>>, %arg3: memref<1x32xf32, #tpu.memory_space<vmem>>, %arg4: memref<1x32xf32, #tpu.memory_space<vmem>>, %arg5: memref<16x32xf32, #tpu.memory_space<vmem>>) attributes {dimension_semantics = [#tpu.dimension_semantics<parallel>], iteration_bounds = array<i64: 1>, scalar_prefetch = 0 : i64, scratch_operands = 0 : i64, tpu.core_type = #tpu.core_type<tc>, window_params = [{transform_indices = @transform_0, window_bounds = array<i64: 16, 32>}, {transform_indices = @transform_1, window_bounds = array<i64: 16, 32>}, {pipeline_mode = #tpu.pipeline_mode<synchronous>, transform_indices = @transform_2, window_bounds = array<i64: 1, 32>}, {pipeline_mode = #tpu.pipeline_mode<synchronous>, transform_indices = @transform_3, window_bounds = array<i64: 1, 32>}, {transform_indices = @transform_4, window_bounds = array<i64: 16, 32>}]} {
    %c0 = arith.constant 0 : index
    %c0_0 = arith.constant 0 : index
    %0 = vector.load %arg1[%c0, %c0_0] : memref<16x32xf32, #tpu.memory_space<vmem>>, vector<16x32xf32>
    %c0_1 = arith.constant 0 : index
    %c0_2 = arith.constant 0 : index
    %1 = vector.load %arg2[%c0_1, %c0_2] : memref<16x32xf32, #tpu.memory_space<vmem>>, vector<16x32xf32>
    %2 = arith.addf %0, %1 : vector<16x32xf32>
    %cst = arith.constant dense<0.000000e+00> : vector<16xf32>
    %3 = vector.multi_reduction <add>, %2, %cst [1] : vector<16x32xf32> to vector<16xf32>
    %4 = vector.shape_cast %3 : vector<16xf32> to vector<16x1xf32>
    %cst_3 = arith.constant 3.200000e+01 : f32
    %5 = vector.broadcast %cst_3 : f32 to vector<16x1xf32>
    %6 = arith.divf %4, %5 : vector<16x1xf32>
    %7 = arith.mulf %2, %2 : vector<16x32xf32>
    %cst_4 = arith.constant dense<0.000000e+00> : vector<16xf32>
    %8 = vector.multi_reduction <add>, %7, %cst_4 [1] : vector<16x32xf32> to vector<16xf32>
    %9 = vector.shape_cast %8 : vector<16xf32> to vector<16x1xf32>
    %cst_5 = arith.constant 3.200000e+01 : f32
    %10 = vector.broadcast %cst_5 : f32 to vector<16x1xf32>
    %11 = arith.divf %9, %10 : vector<16x1xf32>
    %12 = arith.mulf %6, %6 : vector<16x1xf32>
    %13 = arith.subf %11, %12 : vector<16x1xf32>
    %cst_6 = arith.constant 0.000000e+00 : f32
    %14 = vector.broadcast %cst_6 : f32 to vector<16x1xf32>
    %15 = arith.maximumf %13, %14 : vector<16x1xf32>
    %cst_7 = arith.constant 9.99999996E-13 : f32
    %16 = vector.broadcast %cst_7 : f32 to vector<16x1xf32>
    %17 = arith.addf %15, %16 : vector<16x1xf32>
    %18 = math.rsqrt %17 : vector<16x1xf32>
    %19 = vector.broadcast %6 : vector<16x1xf32> to vector<16x32xf32>
    %20 = arith.subf %2, %19 : vector<16x32xf32>
    %21 = vector.broadcast %18 : vector<16x1xf32> to vector<16x32xf32>
    %22 = arith.mulf %20, %21 : vector<16x32xf32>
    %c0_8 = arith.constant 0 : index
    %c0_9 = arith.constant 0 : index
    %23 = vector.load %arg3[%c0_8, %c0_9] : memref<1x32xf32, #tpu.memory_space<vmem>>, vector<1x32xf32>
    %24 = vector.broadcast %23 : vector<1x32xf32> to vector<16x32xf32>
    %25 = arith.mulf %22, %24 : vector<16x32xf32>
    %c0_10 = arith.constant 0 : index
    %c0_11 = arith.constant 0 : index
    %26 = vector.load %arg4[%c0_10, %c0_11] : memref<1x32xf32, #tpu.memory_space<vmem>>, vector<1x32xf32>
    %27 = vector.broadcast %26 : vector<1x32xf32> to vector<16x32xf32>
    %28 = arith.addf %25, %27 : vector<16x32xf32>
    %c0_12 = arith.constant 0 : index
    %c0_13 = arith.constant 0 : index
    %29 = vector.load %arg5[%c0_12, %c0_13] : memref<16x32xf32, #tpu.memory_space<vmem>>, vector<16x32xf32>
    tpu.vector_store %arg5[%c0_12, %c0_13], %28 {strides = array<i32>} : memref<16x32xf32, #tpu.memory_space<vmem>>, vector<16x32xf32>,
    return
  }
  func.func @transform_0(%arg0: i32) -> (i32, i32) {
    %c0_i32 = arith.constant 0 : i32
    %c0_i32_0 = arith.constant 0 : i32
    return %arg0, %c0_i32 : i32, i32
  }
  func.func @transform_1(%arg0: i32) -> (i32, i32) {
    %c0_i32 = arith.constant 0 : i32
    %c0_i32_0 = arith.constant 0 : i32
    return %arg0, %c0_i32 : i32, i32
  }
  func.func @transform_2(%arg0: i32) -> (i32, i32) {
    %c0_i32 = arith.constant 0 : i32
    %c0_i32_0 = arith.constant 0 : i32
    %c0_i32_1 = arith.constant 0 : i32
    return %c0_i32, %c0_i32_0 : i32, i32
  }
  func.func @transform_3(%arg0: i32) -> (i32, i32) {
    %c0_i32 = arith.constant 0 : i32
    %c0_i32_0 = arith.constant 0 : i32
    %c0_i32_1 = arith.constant 0 : i32
    return %c0_i32, %c0_i32_0 : i32, i32
  }
  func.func @transform_4(%arg0: i32) -> (i32, i32) {
    %c0_i32 = arith.constant 0 : i32
    %c0_i32_0 = arith.constant 0 : i32
    return %arg0, %c0_i32 : i32, i32
  }
}

module attributes {stable_mosaic.version = 11 : i64} {
  func.func @_linear_kernel(%arg0: i32, %arg1: i32, %arg2: i32, %arg3: memref<16x128xbf16, #tpu.memory_space<vmem>>, %arg4: memref<128x128xbf16, #tpu.memory_space<vmem>>, %arg5: memref<1x128xf32, #tpu.memory_space<vmem>>, %arg6: memref<16x128xf32, #tpu.memory_space<vmem>>, %arg7: memref<16x128xf32, #tpu.memory_space<vmem>>) attributes {dimension_semantics = [#tpu.dimension_semantics<parallel>, #tpu.dimension_semantics<parallel>, #tpu.dimension_semantics<arbitrary>], iteration_bounds = array<i64: 1, 1, 1>, scalar_prefetch = 0 : i64, scratch_operands = 1 : i64, tpu.core_type = #tpu.core_type<tc>, window_params = [{transform_indices = @transform_0, window_bounds = array<i64: 16, 128>}, {transform_indices = @transform_1, window_bounds = array<i64: 128, 128>}, {transform_indices = @transform_2, window_bounds = array<i64: 1, 128>}, {transform_indices = @transform_3, window_bounds = array<i64: 16, 128>}]} {
    %c0_i32 = arith.constant 0 : i32
    %0 = arith.cmpi eq, %arg2, %c0_i32 : i32
    %1 = arith.extui %0 : i1 to i32
    %c0_i32_0 = arith.constant 0 : i32
    %2 = arith.cmpi ne, %1, %c0_i32_0 : i32
    scf.if %2 {
      %cst_10 = arith.constant 0.000000e+00 : f32
      %12 = vector.broadcast %cst_10 : f32 to vector<16x128xf32>
      %c0_11 = arith.constant 0 : index
      %c0_12 = arith.constant 0 : index
      %13 = vector.load %arg7[%c0_11, %c0_12] : memref<16x128xf32, #tpu.memory_space<vmem>>, vector<16x128xf32>
      tpu.vector_store %arg7[%c0_11, %c0_12], %12 {strides = array<i32>} : memref<16x128xf32, #tpu.memory_space<vmem>>, vector<16x128xf32>,
    } else {
    }
    %c0 = arith.constant 0 : index
    %c0_1 = arith.constant 0 : index
    %3 = vector.load %arg7[%c0, %c0_1] : memref<16x128xf32, #tpu.memory_space<vmem>>, vector<16x128xf32>
    %c0_2 = arith.constant 0 : index
    %c0_3 = arith.constant 0 : index
    %4 = vector.load %arg3[%c0_2, %c0_3] : memref<16x128xbf16, #tpu.memory_space<vmem>>, vector<16x128xbf16>
    %c0_4 = arith.constant 0 : index
    %c0_5 = arith.constant 0 : index
    %5 = vector.load %arg4[%c0_4, %c0_5] : memref<128x128xbf16, #tpu.memory_space<vmem>>, vector<128x128xbf16>
    %cst = arith.constant dense<0.000000e+00> : vector<16x128xf32>
    %6 = tpu.matmul %4, %5, %cst {dimension_numbers = #tpu.dot_dimension_numbers<[1], [0], [0], [1], [0, 0, 1, 1], [], []>} : vector<16x128xbf16>, vector<128x128xbf16>, vector<16x128xf32> -> vector<16x128xf32>
    %7 = arith.addf %3, %6 : vector<16x128xf32>
    %c0_6 = arith.constant 0 : index
    %c0_7 = arith.constant 0 : index
    %8 = vector.load %arg7[%c0_6, %c0_7] : memref<16x128xf32, #tpu.memory_space<vmem>>, vector<16x128xf32>
    tpu.vector_store %arg7[%c0_6, %c0_7], %7 {strides = array<i32>} : memref<16x128xf32, #tpu.memory_space<vmem>>, vector<16x128xf32>,
    %c0_i32_8 = arith.constant 0 : i32
    %9 = arith.cmpi eq, %arg2, %c0_i32_8 : i32
    %10 = arith.extui %9 : i1 to i32
    %c0_i32_9 = arith.constant 0 : i32
    %11 = arith.cmpi ne, %10, %c0_i32_9 : i32
    scf.if %11 {
      %c0_10 = arith.constant 0 : index
      %c0_11 = arith.constant 0 : index
      %12 = vector.load %arg7[%c0_10, %c0_11] : memref<16x128xf32, #tpu.memory_space<vmem>>, vector<16x128xf32>
      %c0_12 = arith.constant 0 : index
      %c0_13 = arith.constant 0 : index
      %13 = vector.load %arg5[%c0_12, %c0_13] : memref<1x128xf32, #tpu.memory_space<vmem>>, vector<1x128xf32>
      %14 = vector.broadcast %13 : vector<1x128xf32> to vector<16x128xf32>
      %15 = arith.addf %12, %14 : vector<16x128xf32>
      %cst_14 = arith.constant 0.000000e+00 : f32
      %16 = vector.broadcast %cst_14 : f32 to vector<16x128xf32>
      %17 = arith.maximumf %15, %16 : vector<16x128xf32>
      %c0_15 = arith.constant 0 : index
      %c0_16 = arith.constant 0 : index
      %18 = vector.load %arg6[%c0_15, %c0_16] : memref<16x128xf32, #tpu.memory_space<vmem>>, vector<16x128xf32>
      tpu.vector_store %arg6[%c0_15, %c0_16], %17 {strides = array<i32>} : memref<16x128xf32, #tpu.memory_space<vmem>>, vector<16x128xf32>,
    } else {
    }
    return
  }
  func.func @transform_0(%arg0: i32, %arg1: i32, %arg2: i32) -> (i32, i32) {
    %c0_i32 = arith.constant 0 : i32
    return %arg0, %arg2 : i32, i32
  }
  func.func @transform_1(%arg0: i32, %arg1: i32, %arg2: i32) -> (i32, i32) {
    %c0_i32 = arith.constant 0 : i32
    return %arg2, %arg1 : i32, i32
  }
  func.func @transform_2(%arg0: i32, %arg1: i32, %arg2: i32) -> (i32, i32) {
    %c0_i32 = arith.constant 0 : i32
    %c0_i32_0 = arith.constant 0 : i32
    return %c0_i32, %arg1 : i32, i32
  }
  func.func @transform_3(%arg0: i32, %arg1: i32, %arg2: i32) -> (i32, i32) {
    %c0_i32 = arith.constant 0 : i32
    return %arg0, %arg1 : i32, i32
  }
}

</mosaic_0001>

<bundles_post_ra>
// kernel: transformer_forward.53
= control target key start
LH: loop header
LB: loop body
LE: loop exit
PB: predicated region body
PF: predicated region fallthrough
CT: control target
= control target key end

     0   :  { %v210_v0 = vmov 0.0   ;;  %vm211_vm0 = vmmov 0   ;;  %s268_s1 = inlined_call_operand.vmem [shape: bf16[128,128], index: 1, kind: input, shape index: {}]   ;;  %s269_s0 = inlined_call_operand.vmem [shape: bf16[16,128], index: 0, kind: input, shape index: {}]   ;;  %s270_s2 = inlined_call_operand.vmem [shape: f32[1,128], index: 2, kind: input, shape index: {}]   ;;  %s271_s3 = inlined_call_operand.vmem [shape: f32[16,128], index: 3, kind: output, shape index: {}]  }
   0x1   :  { %179 = vmatprep.subr.bf16.mxu0 %v210_v0  ;;  %v201_v1 = vld [vmem:[%s268_s1] sm:$0xff]   ;;  %195 = vmatprep.mubr.msk.bf16.mxu0 %vm211_vm0, %v210_v0  ;;  %v202_v2 = vld [vmem:[%s268_s1 + $0x8] sm:$0xff]   ;;  %v203_v3 = vld [vmem:[%s268_s1 + $0x10] sm:$0xff]  }
   0x2   :  { %180 = vmatpush3.bf16.msra.mxu0 %v201_v1  ;;  %v204_v4 = vld [vmem:[%s268_s1 + $0x18] sm:$0xff]   ;;  %v205_v5 = vld [vmem:[%s268_s1 + $0x20] sm:$0xff]   ;;  %v206_v6 = vld [vmem:[%s268_s1 + $0x28] sm:$0xff]  }
   0x3   :  { %181 = vmatprep.subr.bf16.mxu0 %v210_v0  ;;  %v207_v7 = vld [vmem:[%s268_s1 + $0x30] sm:$0xff]   ;;  %v208_v8 = vld [vmem:[%s268_s1 + $0x38] sm:$0xff]   ;;  %v209_v9 = vld [vmem:[%s269_s0] sm:$0xff]  }
   0x4   :  { %v169_v10 = vld [vmem:[%s270_s2] ss:$0 sm:$0xff] }
   0x6   :  { %182 = vmatpush3.bf16.msra.mxu0 %v202_v2 }
   0x7   :  { %183 = vmatprep.subr.bf16.mxu0 %v210_v0 }
   0xa   :  { %184 = vmatpush3.bf16.msra.mxu0 %v203_v3 }
   0xb   :  { %185 = vmatprep.subr.bf16.mxu0 %v210_v0 }
   0xe   :  { %186 = vmatpush3.bf16.msra.mxu0 %v204_v4 }
   0xf   :  { %187 = vmatprep.subr.bf16.mxu0 %v210_v0 }
  0x12   :  { %188 = vmatpush3.bf16.msra.mxu0 %v205_v5 }
  0x13   :  { %189 = vmatprep.subr.bf16.mxu0 %v210_v0 }
  0x16   :  { %190 = vmatpush3.bf16.msra.mxu0 %v206_v6 }
  0x17   :  { %191 = vmatprep.subr.bf16.mxu0 %v210_v0 }
  0x1a   :  { %192 = vmatpush3.bf16.msra.mxu0 %v207_v7 }
  0x1b   :  { %193 = vmatprep.subr.bf16.mxu0 %v210_v0 }
  0x1e   :  { %194 = vmatpush3.bf16.msra.mxu0 %v208_v8 }
  0x21   :  { %196 = vmatmul.mubr.bf16.vlgmr.msra.gmra.mrb[0].mxu0 %v209_v9 }
  0xf4   :  { %v129_v11 = vpop.f32.mrb[0].mxu0 }
  0xf5   :  { %v152_v12 = vadd.f32 %v169_v10, %v129_v11  ;;  %v197_v13 = vpop.f32.mrb[1].mxu0 }
  0xf6   :  { %v132_v14 = vpop.f32.mrb[2].mxu0 }
  0xf7   :  { %154 = vst [vmem:[%s271_s3] sm:$0xff] %v152_v12  ;;  %v153_v15 = vadd.f32 %v169_v10, %v132_v14  ;;  %v198_v16 = vpop.f32.mrb[3].mxu0 }
  0xf9   :  { %155 = vst [vmem:[%s271_s3 + $0x8] sm:$0xff] %v153_v15 }

// kernel: transformer_forward.56
= control target key start
LH: loop header
LB: loop body
LE: loop exit
PB: predicated region body
PF: predicated region fallthrough
CT: control target
= control target key end

     0   :  { %vm23_vm0 = vcmask 261120   ;;  %s142_s0 = inlined_call_operand.vmem [shape: f32[16,32], index: 0, kind: input, shape index: {}]   ;;  %s143_s1 = inlined_call_operand.vmem [shape: f32[16,32], index: 1, kind: input, shape index: {}]   ;;  %s144_s2 = inlined_call_operand.vmem [shape: f32[1,32], index: 2, kind: input, shape index: {}]   ;;  %s145_s3 = inlined_call_operand.vmem [shape: f32[1,32], index: 3, kind: input, shape index: {}]   ;;  %s146_s4 = inlined_call_operand.vmem [shape: f32[16,32], index: 4, kind: output, shape index: {}]  }
   0x1   :  { %v17_v0 = vld [vmem:[%s142_s0] sm:$0xff]  ;;  %v18_v2 = vld [vmem:[%s142_s0 + $0x8] sm:$0xff] }
   0x2   :  { %v19_v1 = vld [vmem:[%s143_s1] sm:$0xff]  ;;  %v20_v4 = vld [vmem:[%s143_s1 + $0x8] sm:$0xff] }
   0x3   :  { %v21_v3 = vadd.f32 %v19_v1, %v17_v0  ;;  %v22_v5 = vadd.f32 %v20_v4, %v18_v2  ;;  %v81_v30 = vld [vmem:[%s144_s2] ss:$0 sm:$0xff] }
   0x4   :  { %v82_v32 = vld [vmem:[%s145_s3] ss:$0 sm:$0xff] }
   0x5   :  { %v24_v6 = vsel %vm23_vm0, %v21_v3, 0.0  ;;  %v33_v7 = vmul.f32 %v21_v3, %v21_v3  ;;  %v34_v8 = vmul.f32 %v22_v5, %v22_v5  ;;  %v27_v10 = vsel %vm23_vm0, %v22_v5, 0.0 }
   0x6   :  { %25 = vadd.xlane.f32.xlu0 %v24_v6 }
   0x7   :  { %v35_v9 = vsel %vm23_vm0, %v33_v7, 0.0  ;;  %v38_v11 = vsel %vm23_vm0, %v34_v8, 0.0 }
   0x8   :  { %36 = vadd.xlane.f32.xlu1 %v35_v9 }
   0xa   :  { %28 = vadd.xlane.f32.xlu0 %v27_v10 }
   0xc   :  { %39 = vadd.xlane.f32.xlu1 %v38_v11 }
  0x93   :  { %v26_v12 = vpop.xlane.xlu0 %25 }
  0x94   :  { %v31_v13 = vmul.f32 0.03125, %v26_v12 }
  0x95   :  { %v37_v14 = vpop.xlane.xlu1 %36 }
  0x96   :  { %v43_v15 = vmul.f32 %v31_v13, %v31_v13  ;;  %v41_v16 = vmul.f32 0.03125, %v37_v14  ;;  %v53_v28 = vsub.f32 %v21_v3, %v31_v13 }
  0x97   :  { %v29_v17 = vpop.xlane.xlu0 %28 }
  0x98   :  { %v45_v18 = vsub.f32 %v41_v16, %v43_v15  ;;  %v32_v19 = vmul.f32 0.03125, %v29_v17 }
  0x99   :  { %v40_v20 = vpop.xlane.xlu1 %39 }
  0x9a   :  { %v47_v21 = vmax.f32 %v45_v18, 0.0  ;;  %v44_v22 = vmul.f32 %v32_v19, %v32_v19  ;;  %v42_v23 = vmul.f32 0.03125, %v40_v20  ;;  %v54_v34 = vsub.f32 %v22_v5, %v32_v19 }
  0x9c   :  { %v49_v24 = vadd.f32 1e-12, %v47_v21  ;;  %v46_v25 = vsub.f32 %v42_v23, %v44_v22 }
  0x9e   :  { %83 = vrsqrt.f32 %v49_v24  ;;  %v48_v26 = vmax.f32 %v46_v25, 0.0 }
  0xa0   :  { %v50_v27 = vadd.f32 1e-12, %v48_v26 }
  0xa2   :  { %85 = vrsqrt.f32 %v50_v27 }
  0xa8   :  { %v84_v29 = vpop.eup %83 }
  0xa9   :  { %v55_v31 = vmul.f32 %v84_v29, %v53_v28 }
  0xab   :  { %v64_v33 = vmul.f32 %v81_v30, %v55_v31 }
  0xac   :  { %v86_v35 = vpop.eup %85 }
  0xad   :  { %v73_v36 = vadd.f32 %v82_v32, %v64_v33  ;;  %v56_v37 = vmul.f32 %v86_v35, %v54_v34 }
  0xaf   :  { %75 = vst.msk [vmem:[%s146_s4] sm:$0xff] %vm23_vm0, %v73_v36  ;;  %v65_v38 = vmul.f32 %v81_v30, %v56_v37 }
  0xb1   :  { %v74_v39 = vadd.f32 %v82_v32, %v65_v38 }
  0xb3   :  { %76 = vst.msk [vmem:[%s146_s4 + $0x8] sm:$0xff] %vm23_vm0, %v74_v39 }

// kernel: transformer_forward.54
= control target key start
LH: loop header
LB: loop body
LE: loop exit
PB: predicated region body
PF: predicated region fallthrough
CT: control target
= control target key end

     0   :  { %s1478_s15 = smov 0   ;;  %s1919_s0 = inlined_call_operand.vmem [shape: f32[2,8,4,8], index: 0, kind: input, shape index: {}]   ;;  %s1920_s1 = inlined_call_operand.vmem [shape: f32[2,8,4,8], index: 1, kind: input, shape index: {}]   ;;  %s1921_s2 = inlined_call_operand.vmem [shape: f32[2,8,4,8], index: 2, kind: input, shape index: {}]   ;;  %s1922_s3 = inlined_call_operand.vmem [shape: f32[2,1,8,8], index: 3, kind: input, shape index: {}]   ;;  %s1923_s4 = inlined_call_operand.vmem [shape: f32[2,8,4,8], index: 4, kind: output, shape index: {}]  }
   0x1 LB: > { %s1323_s16 = sadd.s32 4294967295, %s1448_s15   ;;  %p1327_p0 = scmp.ge.s32.totalorder %s1448_s15, 1  ;;  %s1448_s15 = sphi %s1478_s15, %s14_s15  }
   0x2   : > { %p191_p1 = scmp.lt.s32.totalorder %s1448_s15, 3 }
   0x4   : > { %p192_p2 = pnand %p1327_p0, %p191_p1 }
   0x5   : > { %p231_p3 = scmp.lt.s32.totalorder (!%p192_p2), %s1323_s16, 1  ;;  %v1450_v0 = vmov (!%p192_p2), 0.0   ;;  %vm1451_vm0 = vmmov (!%p192_p2), 0   ;;  %vm322_vm1 = vcmask (!%p192_p2), 1041409   ;;  %vm325_vm2 = vcmask (!%p192_p2), 1042434  }
   0x6   : > { %195 = sbr.rel (%p192_p2) target bundleno = 1349 (0x545), region = 36  ;;  %1367 = vmatprep.subr.bf16.mxu0 (!%p192_p2), %v1450_v0  ;;  %1373 = vmatprep.subr.bf16.mxu1 (!%p192_p2), %v1450_v0  ;;  %vm328_vm3 = vcmask (!%p192_p2), 1043459   ;;  %vm331_vm4 = vcmask (!%p192_p2), 1044484   ;;  %vm334_vm5 = vcmask (!%p192_p2), 1045509   ;;  %vm337_vm6 = vcmask (!%p192_p2), 1046534  }
   0x7   : > { %1369 = vmatprep.mubr.msk.bf16.mxu0 (!%p192_p2), %vm1451_vm0, %v1450_v0  ;;  %1375 = vmatprep.mubr.msk.bf16.mxu1 (!%p192_p2), %vm1451_vm0, %v1450_v0  ;;  %vm340_vm7 = vcmask (!%p192_p2), 1047559   ;;  %vm374_vm8 = vcmask (!%p192_p2), 64512   ;;  %vm470_vm10 = vcmask (!%p192_p2), 1043456   ;;  %vm572_vm11 = vcmask (!%p192_p2), 57344  }
   0xd   : > { %s1925_s16 = smov (!%p231_p3, %s1323_s16), 1 }
   0xe   : > { %s1495_s17 = sshll.u32 %s1925_s16, 5  ;;  %s1334_s24 = sshll.u32 %s1925_s16, 3 }
   0xf   : > { %s240_s20 = scalar_lea.vmem %s1920_s1, %s1495_s17  ;;  %s1505_s23 = scalar_lea.vmem %s1919_s0, %s1495_s17 }
  0x10   : > { %v273_v1 = vld [vmem:[%s240_s20] sm:$0xf]  ;;  %v274_v2 = vld [vmem:[%s240_s20 + $0x4] sm:$0xf]  ;;  %v275_v3 = vld [vmem:[%s240_s20 + $0x8] sm:$0xf]  ;;  %s249_s27 = scalar_lea.vmem %s1922_s3, %s1334_s24  ;;  %s245_s30 = scalar_lea.vmem %s1921_s2, %s1495_s17 }
  0x11   : > { %v276_v4 = vld [vmem:[%s240_s20 + $0xc] sm:$0xf]  ;;  %v277_v5 = vld [vmem:[%s240_s20 + $0x10] sm:$0xf]  ;;  %v278_v6 = vld [vmem:[%s240_s20 + $0x14] sm:$0xf]  ;;  %v281_v7 = vpack.c.bf16 %v273_v1, %v273_v1  ;;  %v282_v8 = vpack.c.bf16 %v274_v2, %v274_v2  ;;  %v283_v9 = vpack.c.bf16 %v275_v3, %v275_v3  ;;  %s1746_s7 = scalar_lea.vmem %s1923_s4, %s1495_s17 }
  0x12   : > { %v279_v10 = vld [vmem:[%s240_s20 + $0x18] sm:$0xf]  ;;  %v280_v11 = vld [vmem:[%s240_s20 + $0x1c] sm:$0xf]  ;;  %v284_v12 = vpack.c.bf16 %v276_v4, %v276_v4  ;;  %v285_v13 = vpack.c.bf16 %v277_v5, %v277_v5  ;;  %v286_v14 = vpack.c.bf16 %v278_v6, %v278_v6  ;;  %v257_v15 = vld [vmem:[%s1505_s23] sm:$0xf] }
  0x13   : > { %v287_v16 = vpack.c.bf16 %v279_v10, %v279_v10  ;;  %v288_v17 = vpack.c.bf16 %v280_v11, %v280_v11  ;;  %v1508_v18 = vunpack.c.l.b16 %v281_v7  ;;  %v1510_v19 = vunpack.c.l.b16 %v282_v8  ;;  %v258_v20 = vld [vmem:[%s1505_s23 + $0x4] sm:$0xf]  ;;  %v259_v25 = vld [vmem:[%s1505_s23 + $0x8] sm:$0xf]  ;;  %v260_v26 = vld [vmem:[%s1505_s23 + $0xc] sm:$0xf] }
  0x14   : > { %v1513_v21 = vunpack.c.l.b16 %v283_v9  ;;  %v1515_v22 = vunpack.c.l.b16 %v284_v12  ;;  %v1517_v23 = vunpack.c.l.b16 %v285_v13  ;;  %v1519_v24 = vunpack.c.l.b16 %v286_v14  ;;  %v261_v27 = vld [vmem:[%s1505_s23 + $0x10] sm:$0xf]  ;;  %v262_v31 = vld [vmem:[%s1505_s23 + $0x14] sm:$0xf]  ;;  %v263_v32 = vld [vmem:[%s1505_s23 + $0x18] sm:$0xf] }
  0x15   : > { %v1524_v28 = vunpack.c.l.b16 %v287_v16  ;;  %v1526_v29 = vunpack.c.l.b16 %v288_v17  ;;  %v359_v30 = vrot.slane %v1510_v19, 7  ;;  %v265_v33 = vpack.c.bf16 %v257_v15, %v257_v15  ;;  %v264_v38 = vld [vmem:[%s1505_s23 + $0x1c] sm:$0xf]  ;;  %v1586_v17 = vld [vmem:[%s249_s27] sm:$0xff] }
  0x16   : > { %v361_v34 = vrot.slane %v1513_v21, 6  ;;  %v363_v35 = vrot.slane %v1515_v22, 5  ;;  %v365_v36 = vrot.slane %v1517_v23, 4  ;;  %v367_v37 = vrot.slane %v1519_v24, 3 }
  0x17   : > { %v360_v39 = vsel %vm322_vm1, %v359_v30, %v1508_v18  ;;  %v369_v40 = vrot.slane %v1524_v28, 2  ;;  %v371_v41 = vrot.slane %v1526_v29, 1  ;;  %v266_v42 = vpack.c.bf16 %v258_v20, %v258_v20 }
  0x18   : > { %v362_v43 = vsel %vm325_vm2, %v361_v34, %v360_v39  ;;  %v267_v44 = vpack.c.bf16 %v259_v25, %v259_v25  ;;  %v268_v45 = vpack.c.bf16 %v260_v26, %v260_v26  ;;  %v269_v46 = vpack.c.bf16 %v261_v27, %v261_v27  ;;  %v291_v39 = vld [vmem:[%s245_s30 + $0x8] sm:$0xf] }
  0x19   : > { %v364_v47 = vsel %vm328_vm3, %v363_v35, %v362_v43  ;;  %v270_v48 = vpack.c.bf16 %v262_v31, %v262_v31  ;;  %v271_v49 = vpack.c.bf16 %v263_v32, %v263_v32  ;;  %v272_v50 = vpack.c.bf16 %v264_v38, %v264_v38  ;;  %v290_v38 = vld [vmem:[%s245_s30 + $0x4] sm:$0xf] }
  0x1a   : > { %v366_v51 = vsel %vm331_vm4, %v365_v36, %v364_v47  ;;  %v1543_v52 = vunpack.c.l.b16 %v265_v33  ;;  %v1545_v53 = vunpack.c.l.b16 %v266_v42  ;;  %v1547_v54 = vunpack.c.l.b16 %v267_v44  ;;  %v292_v42 = vld [vmem:[%s245_s30 + $0xc] sm:$0xf]  ;;  %v293_v44 = vld [vmem:[%s245_s30 + $0x10] sm:$0xf] }
  0x1b   : > { %v368_v55 = vsel %vm334_vm5, %v367_v37, %v366_v51  ;;  %v1550_v56 = vunpack.c.l.b16 %v268_v45  ;;  %v1552_v57 = vunpack.c.l.b16 %v269_v46  ;;  %v1554_v58 = vunpack.c.l.b16 %v270_v48  ;;  %v294_v48 = vld [vmem:[%s245_s30 + $0x14] sm:$0xf]  ;;  %v295_v51 = vld [vmem:[%s245_s30 + $0x18] sm:$0xf] }
  0x1c   : > { %v370_v59 = vsel %vm337_vm6, %v369_v40, %v368_v55  ;;  %v1557_v60 = vunpack.c.l.b16 %v271_v49  ;;  %v1559_v61 = vunpack.c.l.b16 %v272_v50  ;;  %v321_v62 = vrot.slane %v1545_v53, 7 }
  0x1d   : > { %v372_v63 = vsel %vm340_vm7, %v371_v41, %v370_v59  ;;  %v324_v1 = vrot.slane %v1547_v54, 6  ;;  %v327_v2 = vrot.slane %v1550_v56, 5  ;;  %v330_v3 = vrot.slane %v1552_v57, 4  ;;  %v289_v41 = vld [vmem:[%s245_s30] sm:$0xf] }
  0x1e   : > { %v373_v4 = vpack.c.b16 %v372_v63, %v372_v63  ;;  %v323_v5 = vsel %vm322_vm1, %v321_v62, %v1543_v52  ;;  %v333_v6 = vrot.slane %v1554_v58, 3  ;;  %v336_v8 = vrot.slane %v1557_v60, 2 }
  0x1f   : > { %v326_v7 = vsel %vm325_vm2, %v324_v1, %v323_v5  ;;  %v339_v11 = vrot.slane %v1559_v61, 1  ;;  %vm422_vm9 = vcmp.gt.f32.partialorder %v1586_v17, 0.0  ;;  %v298_v40 = vpack.c.bf16 %v290_v38, %v290_v38  ;;  %v296_v1 = vld [vmem:[%s245_s30 + $0x1c] sm:$0xf] }
  0x20   : > { %v379_v9 = vsel %vm374_vm8, %v373_v4, 0  ;;  %v329_v10 = vsel %vm328_vm3, %v327_v2, %v326_v7  ;;  %v299_v43 = vpack.c.bf16 %v291_v39, %v291_v39  ;;  %v297_v45 = vpack.c.bf16 %v289_v41, %v289_v41 }
  0x21   : > { %1368 = vmatpush3.bf16.xpose.msra.mxu0 %v379_v9  ;;  %v332_v12 = vsel %vm331_vm4, %v330_v3, %v329_v10  ;;  %v300_v46 = vpack.c.bf16 %v292_v42, %v292_v42  ;;  %v1600_v47 = vunpack.c.l.b16 %v298_v40  ;;  %v301_v49 = vpack.c.bf16 %v293_v44, %v293_v44 }
  0x22   : > { %v335_v13 = vsel %vm334_vm5, %v333_v6, %v332_v12  ;;  %1385 = vmatprep.subr.bf16.mxu0 %v1450_v0  ;;  %v1602_v50 = vunpack.c.l.b16 %v299_v43  ;;  %v302_v55 = vpack.c.bf16 %v294_v48, %v294_v48  ;;  %v1604_v59 = vunpack.c.l.b16 %v297_v45 }
  0x23   : > { %v338_v14 = vsel %vm337_vm6, %v336_v8, %v335_v13  ;;  %v1606_v62 = vunpack.c.l.b16 %v300_v46  ;;  %v452_v63 = vrot.slane %v1600_v47, 7  ;;  %v303_v2 = vpack.c.bf16 %v295_v51, %v295_v51 }
  0x24   : > { %v341_v15 = vsel %vm340_vm7, %v339_v11, %v338_v14  ;;  %v1609_v3 = vunpack.c.l.b16 %v301_v49  ;;  %v454_v4 = vrot.slane %v1602_v50, 6  ;;  %v304_v5 = vpack.c.bf16 %v296_v1, %v296_v1 }
  0x25   : > { %v342_v16 = vpack.c.b16 %v341_v15, %v341_v15  ;;  %v1612_v6 = vunpack.c.l.b16 %v302_v55  ;;  %v453_v7 = vsel %vm322_vm1, %v452_v63, %v1604_v59  ;;  %v456_v8 = vrot.slane %v1606_v62, 5 }
  0x26   : > { %v1617_v9 = vunpack.c.l.b16 %v303_v2  ;;  %v455_v10 = vsel %vm325_vm2, %v454_v4, %v453_v7  ;;  %v458_v11 = vrot.slane %v1609_v3, 4  ;;  %v1621_v12 = vunpack.c.l.b16 %v304_v5 }
  0x27   : > { %v457_v13 = vsel %vm328_vm3, %v456_v8, %v455_v10  ;;  %v460_v14 = vrot.slane %v1612_v6, 3  ;;  %v602_v38 = vrot.slane %v1517_v23, 5  ;;  %v813_v40 = vrot.slane %v1508_v18, 2 }
  0x28   : > { %1370 = vmatmul.mubr.msk.bf16.vlgmr.msra.gmra.mrb[0].mxu0 %vm374_vm8, %v342_v16  ;;  %v459_v15 = vsel %vm331_vm4, %v458_v11, %v457_v13  ;;  %v462_v16 = vrot.slane %v1617_v9, 2  ;;  %v814_v41 = vrot.slane %v1510_v19, 1  ;;  %v581_v42 = vrot.slane %v1543_v52, 1 }
  0x29   : > { %1387 = vmatprep.mubr.msk.bf16.mxu0 %vm1451_vm0, %v1450_v0  ;;  %v604_v43 = vrot.slane %v1519_v24, 4  ;;  %v583_v45 = vrot.slane %v1547_v54, 7  ;;  %v606_v48 = vrot.slane %v1524_v28, 3  ;;  %v817_v55 = vrot.slane %v1515_v22, 7 }
  0x2a   : > { %v815_v46 = vsel %vm322_vm1, %v814_v41, %v813_v40  ;;  %v582_v49 = vsel %vm322_vm1, %v1545_v53, %v581_v42  ;;  %v585_v1 = vrot.slane %v1550_v56, 6  ;;  %v1030_v5 = vrot.slane %v1508_v18, 3 }
  0x2b   : > { %v816_v2 = vsel %vm325_vm2, %v1513_v21, %v815_v46  ;;  %v584_v4 = vsel %vm325_vm2, %v583_v45, %v582_v49  ;;  %v1031_v7 = vrot.slane %v1510_v19, 2  ;;  %v608_v10 = vrot.slane %v1526_v29, 2 }
  0x2c   : > { %v819_v11 = vrot.slane %v1517_v23, 6  ;;  %v587_v13 = vrot.slane %v1552_v57, 5  ;;  %v1036_v41 = vrot.slane %v1517_v23, 7  ;;  %v1015_v45 = vrot.slane %v1543_v52, 3 }
  0x2d   : > { %v1016_v46 = vrot.slane %v1545_v53, 2  ;;  %v593_v23 = vrot.slane %v1559_v61, 2 }
  0xfb   : > { %v415_v20 = vpop.f32.mrb[0].mxu0 }
  0xfc   : > { %v421_v25 = vmul.f32 0.35355338, %v415_v20  ;;  %v1371_v26 = vpop.f32.mrb[1].mxu0  ;;  %v461_v20 = vsel %vm334_vm5, %v460_v14, %v459_v15  ;;  %v818_v14 = vsel %vm328_vm3, %v817_v55, %v816_v2  ;;  %v798_v15 = vrot.slane %v1543_v52, 2 }
  0xfd   : > { %v418_v27 = vpop.f32.mrb[2].mxu0  ;;  %v463_v26 = vsel %vm337_vm6, %v462_v16, %v461_v20  ;;  %v799_v16 = vrot.slane %v1545_v53, 1  ;;  %v586_v20 = vsel %vm328_vm3, %v585_v1, %v584_v4  ;;  %v1038_v1 = vrot.slane %v1519_v24, 6 }
  0xfe   : > { %v1372_v30 = vpop.f32.mrb[3].mxu0  ;;  %v423_v31 = vsel %vm422_vm9, %v421_v25, -10000.0  ;;  %v464_v25 = vrot.slane %v1621_v12, 1  ;;  %v1018_v53 = vrot.slane %v1547_v54, 1  ;;  %v806_v4 = vrot.slane %v1554_v58, 5 }
  0xff   : > { %v424_v32 = vsel %vm374_vm8, %v423_v31, -inf }
 0x100   : > { %425 = vmax.xlane.f32.xlu0 %v424_v32  ;;  %v465_v27 = vsel %vm340_vm7, %v464_v25, %v463_v26  ;;  %v596_v32 = vrot.slane %v1508_v18, 1  ;;  %v1033_v18 = vrot.slane %v1513_v21, 1  ;;  %v1032_v25 = vsel %vm322_vm1, %v1031_v7, %v1030_v5 }
 0x101   : > { %v466_v30 = vpack.c.b16 %v465_v27, %v465_v27  ;;  %v589_v27 = vrot.slane %v1554_v58, 4  ;;  %v1017_v5 = vsel %vm322_vm1, %v1016_v46, %v1015_v45 }
 0x18d   : > { %v426_v33 = vpop.xlane.xlu0 %425 }
 0x18e   : > { %v427_v34 = vsub.f32 %v423_v31, %v426_v33  ;;  %v472_v31 = vsel %vm470_vm10, %v466_v30, 0  ;;  %v598_v33 = vrot.slane %v1513_v21, 7  ;;  %v820_v30 = vsel %vm331_vm4, %v819_v11, %v818_v14 }
 0x18f   : > { %1374 = vmatpush3.bf16.msra.mxu1 %v472_v31  ;;  %v588_v31 = vsel %vm331_vm4, %v587_v13, %v586_v20  ;;  %v808_v11 = vrot.slane %v1557_v60, 4  ;;  %v1019_v13 = vsel %vm325_vm2, %v1018_v53, %v1017_v5  ;;  %v1021_v20 = vrot.slane %v1552_v57, 7 }
 0x190   : > { %v428_v35 = vmul.f32 1.442695, %v427_v34  ;;  %1379 = vmatprep.subr.bf16.mxu1 %v1450_v0  ;;  %v597_v34 = vsel %vm322_vm1, %v1510_v19, %v596_v32  ;;  %v821_v19 = vrot.slane %v1519_v24, 5  ;;  %v800_v32 = vsel %vm322_vm1, %v799_v16, %v798_v15 }
 0x191   : > { %v801_v40 = vsel %vm325_vm2, %v1547_v54, %v800_v32  ;;  %v1042_v15 = vrot.slane %v1526_v29, 4 }
 0x192   : > { %1426 = vpow2.f32 %v428_v35  ;;  %v600_v35 = vrot.slane %v1515_v22, 6  ;;  %v822_v21 = vsel %vm334_vm5, %v821_v19, %v820_v30  ;;  %v1020_v19 = vsel %vm328_vm3, %v1550_v56, %v1019_v13 }
 0x193   : > { %v1023_v30 = vrot.slane %v1554_v58, 6  ;;  %v1027_v58 = vrot.slane %v1559_v61, 4 }
 0x19c   : > { %v1592_v36 = vpop.eup %1426 }
 0x19d   : > { %v430_v37 = vsel %vm374_vm8, %v1592_v36, 0.0 }
 0x19e   : > { %431 = vadd.xlane.f32.xlu0 %v430_v37  ;;  %v599_v37 = vsel %vm325_vm2, %v598_v33, %v597_v34  ;;  %v823_v33 = vrot.slane %v1524_v28, 4  ;;  %v1034_v34 = vsel %vm325_vm2, %v1033_v18, %v1032_v25  ;;  %v810_v18 = vrot.slane %v1559_v61, 3 }
 0x19f   : > { %v601_v39 = vsel %vm328_vm3, %v600_v35, %v599_v37  ;;  %v802_v37 = vrot.slane %v1550_v56, 7 }
 0x1a0   : > { %v603_v44 = vsel %vm331_vm4, %v602_v38, %v601_v39  ;;  %v590_v38 = vsel %vm334_vm5, %v589_v27, %v588_v31  ;;  %v591_v39 = vrot.slane %v1557_v60, 3  ;;  %v824_v49 = vsel %vm337_vm6, %v823_v33, %v822_v21 }
 0x1a1   : > { %v605_v51 = vsel %vm334_vm5, %v604_v43, %v603_v44  ;;  %v825_v43 = vrot.slane %v1526_v29, 3  ;;  %v1035_v44 = vsel %vm328_vm3, %v1515_v22, %v1034_v34  ;;  %v1022_v29 = vsel %vm331_vm4, %v1021_v20, %v1020_v19 }
 0x1a2   : > { %v607_v8 = vsel %vm337_vm6, %v606_v48, %v605_v51  ;;  %v804_v51 = vrot.slane %v1552_v57, 6  ;;  %v592_v22 = vsel %vm337_vm6, %v591_v39, %v590_v38  ;;  %v1037_v52 = vsel %vm331_vm4, %v1036_v41, %v1035_v44 }
 0x1a3   : > { %v609_v26 = vsel %vm340_vm7, %v608_v10, %v607_v8  ;;  %v1040_v8 = vrot.slane %v1524_v28, 5  ;;  %v594_v24 = vsel %vm340_vm7, %v593_v23, %v592_v22  ;;  %v1039_v54 = vsel %vm334_vm5, %v1038_v1, %v1037_v52 }
 0x1a4   : > { %v610_v35 = vpack.c.b16 %v609_v26, %v609_v26  ;;  %v595_v28 = vpack.c.b16 %v594_v24, %v594_v24  ;;  %v1025_v31 = vrot.slane %v1557_v60, 5  ;;  %v1024_v32 = vsel %vm334_vm5, %v1023_v30, %v1022_v29 }
 0x1a5   : > { %v1041_v16 = vsel %vm337_vm6, %v1040_v8, %v1039_v54  ;;  %v1452_v60 = vmov 1966171168   ;;  %v519_v39 = vlaneseq }
 0x1a6   : > { %v615_v55 = vsel %vm374_vm8, %v610_v35, 0  ;;  %v1043_v27 = vsel %vm340_vm7, %v1042_v15, %v1041_v16  ;;  %v1026_v35 = vsel %vm337_vm6, %v1025_v31, %v1024_v32  ;;  %v517_v38 = vunpack.c.l.s4 %v1452_v60 }
 0x1a7   : > { %v1044_v56 = vpack.c.b16 %v1043_v27, %v1043_v27  ;;  %v1028_v21 = vsel %vm340_vm7, %v1027_v58, %v1026_v35 }
 0x1a8   : > { %v518_v61 = vunpack.c.0.s8 %v517_v38 }
 0x1a9   : > { %v1049_v34 = vsel %vm374_vm8, %v1044_v56, 0 }
 0x22b   : > { %v432_v63 = vpop.xlane.xlu0 %431 }
 0x22c   : > { %1428 = vrcp.f32 %v432_v63  ;;  %v803_v63 = vsel %vm328_vm3, %v802_v37, %v801_v40  ;;  %v1029_v37 = vpack.c.b16 %v1028_v21, %v1028_v21  ;;  %v520_v40 = vshrl.u32 %v519_v39, 7 }
 0x22d   : > { %v805_v7 = vsel %vm331_vm4, %v804_v51, %v803_v63 }
 0x22e   : > { %v807_v14 = vsel %vm334_vm5, %v806_v4, %v805_v7  ;;  %v1739_v41 = vsub.s32 %v518_v61, %v520_v40  ;;  %v671_v61 = vrot.slane %v1604_v59, 1 }
 0x22f   : > { %v809_v26 = vsel %vm337_vm6, %v808_v11, %v807_v14 }
 0x230   : > { %v811_v57 = vsel %vm340_vm7, %v810_v18, %v809_v26 }
 0x231   : > { %v812_v33 = vpack.c.b16 %v811_v57, %v811_v57 }
 0x236   : > { %v1429_v42 = vpop.eup %1428 }
 0x237   : > { %v434_v48 = vmul.f32 %v1429_v42, %v1592_v36  ;;  %v826_v36 = vsel %vm340_vm7, %v825_v43, %v824_v49 }
 0x238   : > { %v827_v10 = vpack.c.b16 %v826_v36, %v826_v36 }
 0x239   : > { %v435_v2 = vpack.c.bf16 %v434_v48, %v434_v48 }
 0x23a   : > { %v832_v25 = vsel %vm374_vm8, %v827_v10, 0 }
 0x23b   : > { %1376 = vmatmul.mubr.msk.bf16.vlgmr.msra.gmra.mrb[0].mxu1 %vm374_vm8, %v435_v2 }
 0x23c   : > { %1380 = vmatpush3.bf16.xpose.msra.mxu1 %v615_v55  ;;  %1381 = vmatprep.mubr.msk.bf16.mxu1 %vm1451_vm0, %v1450_v0 }
 0x23d   : > { %1391 = vmatprep.subr.bf16.mxu1 %v1450_v0 }
 0x243   : > { %1382 = vmatmul.mubr.msk.bf16.vlgmr.msra.gmra.mrb[4].mxu1 %vm374_vm8, %v595_v28 }
 0x244   : > { %1392 = vmatpush3.bf16.xpose.msra.mxu1 %v832_v25  ;;  %1393 = vmatprep.mubr.msk.bf16.mxu1 %vm1451_vm0, %v1450_v0 }
 0x245   : > { %1403 = vmatprep.subr.bf16.mxu1 %v1450_v0 }
 0x24b   : > { %1394 = vmatmul.mubr.msk.bf16.vlgmr.msra.gmra.mrb[8].mxu1 %vm374_vm8, %v812_v33 }
 0x24c   : > { %1404 = vmatpush3.bf16.xpose.msra.mxu1 %v1049_v34  ;;  %1405 = vmatprep.mubr.msk.bf16.mxu1 %vm1451_vm0, %v1450_v0 }
 0x253   : > { %1406 = vmatmul.mubr.msk.bf16.vlgmr.msra.gmra.mrb[12].mxu1 %vm374_vm8, %v1029_v37 }
 0x30e   : > { %v508_v42 = vpop.f32.mrb[0].mxu1 }
 0x30f   : > { %v515_v43 = vcombine.high %v508_v42, %v508_v42  ;;  %v522_v44 = vrot.slane %v508_v42, %v1739_v41  ;;  %v1377_v45 = vpop.f32.mrb[1].mxu1  ;;  %v673_v42 = vrot.slane %v1602_v50, 7 }
 0x310   : > { %v511_v46 = vpop.f32.mrb[2].mxu1 }
 0x311   : > { %v529_v48 = vrot.slane %v515_v43, %v1739_v41  ;;  %v530_v49 = vcombine.high %v522_v44, %v522_v44  ;;  %v538_v51 = vrot.slane %v522_v44, %v1739_v41  ;;  %v1378_v55 = vpop.f32.mrb[3].mxu1  ;;  %v672_v43 = vsel %vm322_vm1, %v1600_v47, %v671_v61 }
 0x312   : > { %v675_v44 = vrot.slane %v1606_v62, 6  ;;  %v674_v45 = vsel %vm325_vm2, %v673_v42, %v672_v43  ;;  %v677_v46 = vrot.slane %v1609_v3, 5  ;;  %v681_v55 = vrot.slane %v1617_v9, 3 }
 0x313   : > { %v531_v23 = vcombine.high %v529_v48, %v529_v48  ;;  %v545_v63 = vrot.slane %v529_v48, %v1739_v41  ;;  %v552_v1 = vrot.slane %v530_v49, %v1739_v41  ;;  %v560_v2 = vcombine.high %v538_v51, %v538_v51  ;;  %573 = vst.msk [vmem:[%s1746_s7] sm:$0x1] %vm572_vm11, %v538_v51 }
 0x314   : > { %v676_v48 = vsel %vm328_vm3, %v675_v44, %v674_v45  ;;  %v679_v49 = vrot.slane %v1612_v6, 4 }
 0x315   : > { %v559_v22 = vrot.slane %v531_v23, %v1739_v41  ;;  %v561_v52 = vcombine.high %v545_v63, %v545_v63  ;;  %v562_v53 = vcombine.high %v552_v1, %v552_v1  ;;  %574 = vst.msk [vmem:[%s1746_s7 + $0x4] sm:$0x1] %vm572_vm11, %v552_v1  ;;  %575 = vst.msk [vmem:[%s1746_s7 + $0x8] sm:$0x1] %vm572_vm11, %v560_v2 }
 0x316   : > { %577 = vst.msk [vmem:[%s1746_s7 + $0x10] sm:$0x1] %vm572_vm11, %v545_v63  ;;  %v651_v36 = vpop.f32.mrb[4].mxu1  ;;  %v678_v51 = vsel %vm331_vm4, %v677_v46, %v676_v48  ;;  %v683_v63 = vrot.slane %v1621_v12, 2 }
 0x317   : > { %v563_v4 = vcombine.high %v559_v22, %v559_v22  ;;  %576 = vst.msk [vmem:[%s1746_s7 + $0xc] sm:$0x1] %vm572_vm11, %v562_v53  ;;  %578 = vst.msk [vmem:[%s1746_s7 + $0x14] sm:$0x1] %vm572_vm11, %v559_v22  ;;  %v657_v5 = vmul.f32 0.35355338, %v651_v36  ;;  %v680_v23 = vsel %vm334_vm5, %v679_v49, %v678_v51 }
 0x318   : > { %579 = vst.msk [vmem:[%s1746_s7 + $0x18] sm:$0x1] %vm572_vm11, %v561_v52  ;;  %v1383_v7 = vpop.f32.mrb[5].mxu1  ;;  %v682_v1 = vsel %vm337_vm6, %v681_v55, %v680_v23  ;;  %v888_v53 = vrot.slane %v1604_v59, 2  ;;  %v889_v36 = vrot.slane %v1600_v47, 1 }
 0x319   : > { %v654_v8 = vpop.f32.mrb[6].mxu1  ;;  %580 = vst.msk [vmem:[%s1746_s7 + $0x1c] sm:$0x1] %vm572_vm11, %v563_v4  ;;  %v658_v54 = vsel %vm422_vm9, %v657_v5, -10000.0  ;;  %v684_v2 = vsel %vm340_vm7, %v683_v63, %v682_v1  ;;  %v892_v5 = vrot.slane %v1606_v62, 7 }
 0x31a   : > { %v1384_v24 = vpop.f32.mrb[7].mxu1  ;;  %v659_v10 = vsel %vm374_vm8, %v658_v54, -inf  ;;  %v685_v22 = vpack.c.b16 %v684_v2, %v684_v2  ;;  %v890_v4 = vsel %vm322_vm1, %v889_v36, %v888_v53  ;;  %v1105_v8 = vrot.slane %v1604_v59, 3 }
 0x31b   : > { %660 = vmax.xlane.f32.xlu1 %v659_v10  ;;  %v891_v7 = vsel %vm325_vm2, %v1602_v50, %v890_v4  ;;  %v1106_v24 = vrot.slane %v1600_v47, 2  ;;  %v1111_v59 = vrot.slane %v1609_v3, 7 }
 0x31c   : > { %v690_v52 = vsel %vm470_vm10, %v685_v22, 0  ;;  %v893_v10 = vsel %vm328_vm3, %v892_v5, %v891_v7 }
 0x31d   : > { %1386 = vmatpush3.bf16.msra.mxu0 %v690_v52 }
 0x31e   : > { %v868_v11 = vpop.f32.mrb[8].mxu1  ;;  %1397 = vmatprep.subr.bf16.mxu0 %v1450_v0 }
 0x31f   : > { %v874_v13 = vmul.f32 0.35355338, %v868_v11  ;;  %v1395_v14 = vpop.f32.mrb[9].mxu1  ;;  %v1108_v11 = vrot.slane %v1602_v50, 1 }
 0x320   : > { %v871_v15 = vpop.f32.mrb[10].mxu1  ;;  %v1107_v14 = vsel %vm322_vm1, %v1106_v24, %v1105_v8 }
 0x321   : > { %v1396_v28 = vpop.f32.mrb[11].mxu1  ;;  %v875_v16 = vsel %vm422_vm9, %v874_v13, -10000.0  ;;  %v896_v13 = vrot.slane %v1612_v6, 5 }
 0x322   : > { %v876_v20 = vsel %vm374_vm8, %v875_v16, -inf }
 0x323   : > { %877 = vmax.xlane.f32.xlu1 %v876_v20  ;;  %v1109_v20 = vsel %vm325_vm2, %v1108_v11, %v1107_v14 }
 0x324   : > { %v1110_v50 = vsel %vm328_vm3, %v1606_v62, %v1109_v20 }
 0x326   : > { %v1085_v18 = vpop.f32.mrb[12].mxu1 }
 0x327   : > { %v1091_v19 = vmul.f32 0.35355338, %v1085_v18  ;;  %v1407_v25 = vpop.f32.mrb[13].mxu1  ;;  %v900_v18 = vrot.slane %v1621_v12, 3 }
 0x328   : > { %v1088_v26 = vpop.f32.mrb[14].mxu1  ;;  %v1113_v25 = vrot.slane %v1612_v6, 6 }
 0x329   : > { %v1408_v27 = vpop.f32.mrb[15].mxu1  ;;  %v1092_v30 = vsel %vm422_vm9, %v1091_v19, -10000.0  ;;  %v1112_v26 = vsel %vm331_vm4, %v1111_v59, %v1110_v50 }
 0x32a   : > { %v1093_v29 = vsel %vm374_vm8, %v1092_v30, -inf }
 0x32b   : > { %1094 = vmax.xlane.f32.xlu0 %v1093_v29  ;;  %v1115_v29 = vrot.slane %v1617_v9, 5 }
 0x3a8   : > { %v661_v57 = vpop.xlane.xlu1 %660 }
 0x3a9   : > { %v662_v56 = vsub.f32 %v658_v54, %v661_v57  ;;  %v894_v54 = vrot.slane %v1609_v3, 6  ;;  %v1114_v57 = vsel %vm334_vm5, %v1113_v25, %v1112_v26 }
 0x3ab   : > { %v663_v31 = vmul.f32 1.442695, %v662_v56  ;;  %v895_v15 = vsel %vm331_vm4, %v894_v54, %v893_v10 }
 0x3ac   : > { %v897_v47 = vsel %vm334_vm5, %v896_v13, %v895_v15 }
 0x3ad   : > { %1430 = vpow2.f32 %v663_v31  ;;  %v1117_v31 = vrot.slane %v1621_v12, 4 }
 0x3b0   : > { %v878_v32 = vpop.xlane.xlu1 %877 }
 0x3b1   : > { %v879_v33 = vsub.f32 %v875_v16, %v878_v32  ;;  %v898_v16 = vrot.slane %v1617_v9, 4  ;;  %v1116_v32 = vsel %vm337_vm6, %v1115_v29, %v1114_v57 }
 0x3b3   : > { %v880_v58 = vmul.f32 1.442695, %v879_v33  ;;  %v899_v19 = vsel %vm337_vm6, %v898_v16, %v897_v47 }
 0x3b4   : > { %v901_v27 = vsel %vm340_vm7, %v900_v18, %v899_v19 }
 0x3b5   : > { %1432 = vpow2.f32 %v880_v58  ;;  %v902_v3 = vpack.c.b16 %v901_v27, %v901_v27  ;;  %v1118_v58 = vsel %vm340_vm7, %v1117_v31, %v1116_v32 }
 0x3b6   : > { %v1119_v9 = vpack.c.b16 %v1118_v58, %v1118_v58 }
 0x3b7   : > { %v1778_v34 = vpop.eup %1430  ;;  %v907_v6 = vsel %vm470_vm10, %v902_v3, 0 }
 0x3b8   : > { %v1095_v35 = vpop.xlane.xlu0 %1094  ;;  %v665_v21 = vsel %vm374_vm8, %v1778_v34, 0.0 }
 0x3b9   : > { %v1096_v37 = vsub.f32 %v1092_v30, %v1095_v35  ;;  %666 = vadd.xlane.f32.xlu1 %v665_v21 }
 0x3bb   : > { %v1097_v17 = vmul.f32 1.442695, %v1096_v37  ;;  %v1124_v37 = vsel %vm470_vm10, %v1119_v9, 0 }
 0x3bd   : > { %1434 = vpow2.f32 %v1097_v17 }
 0x3bf   : > { %v1782_v60 = vpop.eup %1432 }
 0x3c0   : > { %v882_v38 = vsel %vm374_vm8, %v1782_v60, 0.0 }
 0x3c1   : > { %883 = vadd.xlane.f32.xlu0 %v882_v38 }
 0x3c7   : > { %v1786_v39 = vpop.eup %1434 }
 0x3c8   : > { %v1099_v40 = vsel %vm374_vm8, %v1786_v39, 0.0 }
 0x3c9   : > { %1100 = vadd.xlane.f32.xlu1 %v1099_v40 }
 0x446   : > { %v667_v28 = vpop.xlane.xlu1 %666 }
 0x447   : > { %1436 = vrcp.f32 %v667_v28 }
 0x44e   : > { %v884_v30 = vpop.xlane.xlu0 %883 }
 0x44f   : > { %1438 = vrcp.f32 %v884_v30 }
 0x451   : > { %v1437_v56 = vpop.eup %1436 }
 0x452   : > { %v669_v62 = vmul.f32 %v1437_v56, %v1778_v34 }
 0x454   : > { %v670_v33 = vpack.c.bf16 %v669_v62, %v669_v62 }
 0x456   : > { %1388 = vmatmul.mubr.msk.bf16.vlgmr.msra.gmra.mrb[4].mxu0 %vm374_vm8, %v670_v33  ;;  %v1101_v35 = vpop.xlane.xlu1 %1100 }
 0x457   : > { %1398 = vmatpush3.bf16.msra.mxu0 %v907_v6  ;;  %1440 = vrcp.f32 %v1101_v35  ;;  %1399 = vmatprep.mubr.msk.bf16.mxu0 %vm1451_vm0, %v1450_v0 }
 0x458   : > { %1409 = vmatprep.subr.bf16.mxu0 %v1450_v0 }
 0x459   : > { %v1439_v12 = vpop.eup %1438 }
 0x45a   : > { %v886_v34 = vmul.f32 %v1439_v12, %v1782_v60 }
 0x45c   : > { %v887_v21 = vpack.c.bf16 %v886_v34, %v886_v34 }
 0x45e   : > { %1400 = vmatmul.mubr.msk.bf16.vlgmr.msra.gmra.mrb[8].mxu0 %vm374_vm8, %v887_v21 }
 0x45f   : > { %1410 = vmatpush3.bf16.msra.mxu0 %v1124_v37  ;;  %1411 = vmatprep.mubr.msk.bf16.mxu0 %vm1451_vm0, %v1450_v0 }
 0x461   : > { %v1441_v17 = vpop.eup %1440 }
 0x462   : > { %v1103_v38 = vmul.f32 %v1441_v17, %v1786_v39 }
 0x464   : > { %v1104_v61 = vpack.c.bf16 %v1103_v38, %v1103_v38 }
 0x466   : > { %1412 = vmatmul.mubr.msk.bf16.vlgmr.msra.gmra.mrb[12].mxu0 %vm374_vm8, %v1104_v61 }
 0x529   : > { %v726_v40 = vpop.f32.mrb[4].mxu0 }
 0x52a   : > { %v733_v42 = vcombine.high %v726_v40, %v726_v40  ;;  %v740_v60 = vrot.slane %v726_v40, %v1739_v41  ;;  %v1389_v43 = vpop.f32.mrb[5].mxu0 }
 0x52b   : > { %v729_v44 = vpop.f32.mrb[6].mxu0 }
 0x52c   : > { %v747_v45 = vrot.slane %v733_v42, %v1739_v41  ;;  %v748_v46 = vcombine.high %v740_v60, %v740_v60  ;;  %v756_v0 = vrot.slane %v740_v60, %v1739_v41  ;;  %v1390_v39 = vpop.f32.mrb[7].mxu0 }
 0x52e   : > { %v749_v48 = vcombine.high %v747_v45, %v747_v45  ;;  %v763_v49 = vrot.slane %v747_v45, %v1739_v41  ;;  %v770_v51 = vrot.slane %v748_v46, %v1739_v41  ;;  %v778_v55 = vcombine.high %v756_v0, %v756_v0  ;;  %790 = vst.msk [vmem:[%s1746_s7 + $0x1] sm:$0x1] %vm572_vm11, %v756_v0 }
 0x530   : > { %v777_v23 = vrot.slane %v749_v48, %v1739_v41  ;;  %v779_v63 = vcombine.high %v763_v49, %v763_v49  ;;  %v780_v1 = vcombine.high %v770_v51, %v770_v51  ;;  %791 = vst.msk [vmem:[%s1746_s7 + $0x5] sm:$0x1] %vm572_vm11, %v770_v51  ;;  %792 = vst.msk [vmem:[%s1746_s7 + $0x9] sm:$0x1] %vm572_vm11, %v778_v55 }
 0x531   : > { %794 = vst.msk [vmem:[%s1746_s7 + $0x11] sm:$0x1] %vm572_vm11, %v763_v49  ;;  %v943_v2 = vpop.f32.mrb[8].mxu0 }
 0x532   : > { %v781_v22 = vcombine.high %v777_v23, %v777_v23  ;;  %793 = vst.msk [vmem:[%s1746_s7 + $0xd] sm:$0x1] %vm572_vm11, %v780_v1  ;;  %795 = vst.msk [vmem:[%s1746_s7 + $0x15] sm:$0x1] %vm572_vm11, %v777_v23  ;;  %v950_v52 = vcombine.high %v943_v2, %v943_v2  ;;  %v957_v53 = vrot.slane %v943_v2, %v1739_v41  ;;  %v1401_v36 = vpop.f32.mrb[9].mxu0 }
 0x533   : > { %796 = vst.msk [vmem:[%s1746_s7 + $0x19] sm:$0x1] %vm572_vm11, %v779_v63  ;;  %v946_v4 = vpop.f32.mrb[10].mxu0 }
 0x534   : > { %797 = vst.msk [vmem:[%s1746_s7 + $0x1d] sm:$0x1] %vm572_vm11, %v781_v22  ;;  %v964_v5 = vrot.slane %v950_v52, %v1739_v41  ;;  %v965_v7 = vcombine.high %v957_v53, %v957_v53  ;;  %v973_v8 = vrot.slane %v957_v53, %v1739_v41  ;;  %v1402_v24 = vpop.f32.mrb[11].mxu0 }
 0x536   : > { %v966_v54 = vcombine.high %v964_v5, %v964_v5  ;;  %v980_v10 = vrot.slane %v964_v5, %v1739_v41  ;;  %v987_v11 = vrot.slane %v965_v7, %v1739_v41  ;;  %v995_v13 = vcombine.high %v973_v8, %v973_v8  ;;  %1007 = vst.msk [vmem:[%s1746_s7 + $0x2] sm:$0x1] %vm572_vm11, %v973_v8 }
 0x538   : > { %v994_v14 = vrot.slane %v966_v54, %v1739_v41  ;;  %v996_v15 = vcombine.high %v980_v10, %v980_v10  ;;  %v997_v28 = vcombine.high %v987_v11, %v987_v11  ;;  %1008 = vst.msk [vmem:[%s1746_s7 + $0x6] sm:$0x1] %vm572_vm11, %v987_v11  ;;  %1009 = vst.msk [vmem:[%s1746_s7 + $0xa] sm:$0x1] %vm572_vm11, %v995_v13 }
 0x539   : > { %1011 = vst.msk [vmem:[%s1746_s7 + $0x12] sm:$0x1] %vm572_vm11, %v980_v10  ;;  %v1160_v16 = vpop.f32.mrb[12].mxu0 }
 0x53a   : > { %v998_v20 = vcombine.high %v994_v14, %v994_v14  ;;  %1010 = vst.msk [vmem:[%s1746_s7 + $0xe] sm:$0x1] %vm572_vm11, %v997_v28  ;;  %1012 = vst.msk [vmem:[%s1746_s7 + $0x16] sm:$0x1] %vm572_vm11, %v994_v14  ;;  %v1167_v47 = vcombine.high %v1160_v16, %v1160_v16  ;;  %v1174_v59 = vrot.slane %v1160_v16, %v1739_v41  ;;  %v1413_v18 = vpop.f32.mrb[13].mxu0 }
 0x53b   : > { %1013 = vst.msk [vmem:[%s1746_s7 + $0x1a] sm:$0x1] %vm572_vm11, %v996_v15  ;;  %v1163_v50 = vpop.f32.mrb[14].mxu0 }
 0x53c   : > { %1014 = vst.msk [vmem:[%s1746_s7 + $0x1e] sm:$0x1] %vm572_vm11, %v998_v20  ;;  %v1181_v19 = vrot.slane %v1167_v47, %v1739_v41  ;;  %v1182_v25 = vcombine.high %v1174_v59, %v1174_v59  ;;  %v1190_v26 = vrot.slane %v1174_v59, %v1739_v41  ;;  %v1414_v27 = vpop.f32.mrb[15].mxu0 }
 0x53e   : > { %v1183_v30 = vcombine.high %v1181_v19, %v1181_v19  ;;  %v1197_v29 = vrot.slane %v1181_v19, %v1739_v41  ;;  %v1204_v57 = vrot.slane %v1182_v25, %v1739_v41  ;;  %v1212_v3 = vcombine.high %v1190_v26, %v1190_v26  ;;  %1224 = vst.msk [vmem:[%s1746_s7 + $0x3] sm:$0x1] %vm572_vm11, %v1190_v26 }
 0x540   : > { %v1211_v56 = vrot.slane %v1183_v30, %v1739_v41  ;;  %v1213_v31 = vcombine.high %v1197_v29, %v1197_v29  ;;  %v1214_v62 = vcombine.high %v1204_v57, %v1204_v57  ;;  %1225 = vst.msk [vmem:[%s1746_s7 + $0x7] sm:$0x1] %vm572_vm11, %v1204_v57  ;;  %1226 = vst.msk [vmem:[%s1746_s7 + $0xb] sm:$0x1] %vm572_vm11, %v1212_v3 }
 0x541   : > { %1228 = vst.msk [vmem:[%s1746_s7 + $0x13] sm:$0x1] %vm572_vm11, %v1197_v29 }
 0x542   : > { %v1215_v32 = vcombine.high %v1211_v56, %v1211_v56  ;;  %1227 = vst.msk [vmem:[%s1746_s7 + $0xf] sm:$0x1] %vm572_vm11, %v1214_v62  ;;  %1229 = vst.msk [vmem:[%s1746_s7 + $0x17] sm:$0x1] %vm572_vm11, %v1211_v56 }
 0x543   : > { %1230 = vst.msk [vmem:[%s1746_s7 + $0x1b] sm:$0x1] %vm572_vm11, %v1213_v31 }
 0x544   : > { %1231 = vst.msk [vmem:[%s1746_s7 + $0x1f] sm:$0x1] %vm572_vm11, %v1215_v32 }
 0x545 PF: > { %s14_s15 = sadd.s32 1, %s1448_s15  }
 0x546   : > { %p11_p4 = scmp.ge.s32.totalorder %s14_s15, 4  }
 0x548   :  { %13 = sbr.rel (!%p11_p4) target bundleno = 1 (0x1), region = 75 }

// kernel: transformer_forward.43
= control target key start
LH: loop header
LB: loop body
LE: loop exit
PB: predicated region body
PF: predicated region fallthrough
CT: control target
= control target key end

     0   :  { %v212_v0 = vmov 0.0   ;;  %vm213_vm0 = vmmov 0   ;;  %s270_s1 = inlined_call_operand.vmem [shape: bf16[128,128], index: 1, kind: input, shape index: {}]   ;;  %s271_s0 = inlined_call_operand.vmem [shape: bf16[16,128], index: 0, kind: input, shape index: {}]   ;;  %s272_s2 = inlined_call_operand.vmem [shape: f32[1,128], index: 2, kind: input, shape index: {}]   ;;  %s273_s3 = inlined_call_operand.vmem [shape: f32[16,128], index: 3, kind: output, shape index: {}]  }
   0x1   :  { %181 = vmatprep.subr.bf16.mxu0 %v212_v0  ;;  %v203_v1 = vld [vmem:[%s270_s1] sm:$0xff]   ;;  %197 = vmatprep.mubr.msk.bf16.mxu0 %vm213_vm0, %v212_v0  ;;  %v204_v2 = vld [vmem:[%s270_s1 + $0x8] sm:$0xff]   ;;  %v205_v3 = vld [vmem:[%s270_s1 + $0x10] sm:$0xff]  }
   0x2   :  { %182 = vmatpush3.bf16.msra.mxu0 %v203_v1  ;;  %v206_v4 = vld [vmem:[%s270_s1 + $0x18] sm:$0xff]   ;;  %v207_v5 = vld [vmem:[%s270_s1 + $0x20] sm:$0xff]   ;;  %v208_v6 = vld [vmem:[%s270_s1 + $0x28] sm:$0xff]  }
   0x3   :  { %183 = vmatprep.subr.bf16.mxu0 %v212_v0  ;;  %v209_v7 = vld [vmem:[%s270_s1 + $0x30] sm:$0xff]   ;;  %v210_v8 = vld [vmem:[%s270_s1 + $0x38] sm:$0xff]   ;;  %v211_v9 = vld [vmem:[%s271_s0] sm:$0xff]  }
   0x4   :  { %v171_v10 = vld [vmem:[%s272_s2] ss:$0 sm:$0xff] }
   0x6   :  { %184 = vmatpush3.bf16.msra.mxu0 %v204_v2 }
   0x7   :  { %185 = vmatprep.subr.bf16.mxu0 %v212_v0 }
   0xa   :  { %186 = vmatpush3.bf16.msra.mxu0 %v205_v3 }
   0xb   :  { %187 = vmatprep.subr.bf16.mxu0 %v212_v0 }
   0xe   :  { %188 = vmatpush3.bf16.msra.mxu0 %v206_v4 }
   0xf   :  { %189 = vmatprep.subr.bf16.mxu0 %v212_v0 }
  0x12   :  { %190 = vmatpush3.bf16.msra.mxu0 %v207_v5 }
  0x13   :  { %191 = vmatprep.subr.bf16.mxu0 %v212_v0 }
  0x16   :  { %192 = vmatpush3.bf16.msra.mxu0 %v208_v6 }
  0x17   :  { %193 = vmatprep.subr.bf16.mxu0 %v212_v0 }
  0x1a   :  { %194 = vmatpush3.bf16.msra.mxu0 %v209_v7 }
  0x1b   :  { %195 = vmatprep.subr.bf16.mxu0 %v212_v0 }
  0x1e   :  { %196 = vmatpush3.bf16.msra.mxu0 %v210_v8 }
  0x21   :  { %198 = vmatmul.mubr.bf16.vlgmr.msra.gmra.mrb[0].mxu0 %v211_v9 }
  0xf4   :  { %v129_v11 = vpop.f32.mrb[0].mxu0 }
  0xf5   :  { %v152_v12 = vadd.f32 %v171_v10, %v129_v11  ;;  %v199_v13 = vpop.f32.mrb[1].mxu0 }
  0xf6   :  { %v132_v14 = vpop.f32.mrb[2].mxu0 }
  0xf7   :  { %v154_v15 = vmax.f32 %v152_v12, 0.0  ;;  %v153_v16 = vadd.f32 %v171_v10, %v132_v14  ;;  %v200_v17 = vpop.f32.mrb[3].mxu0 }
  0xf9   :  { %156 = vst [vmem:[%s273_s3] sm:$0xff] %v154_v15  ;;  %v155_v18 = vmax.f32 %v153_v16, 0.0 }
  0xfb   :  { %157 = vst [vmem:[%s273_s3 + $0x8] sm:$0xff] %v155_v18 }

</bundles_post_ra>
